<compile_context>
chip_gen: v7x
topology: tpu7x:2x2x1
jax: 0.10.0
libtpu: 0.0.40
codegen_flags: <defaults>
</compile_context>

<pallas_src>
import functools

import jax
import jax.numpy as jnp
from jax import lax
from jax.experimental import pallas as pl
from jax.experimental.pallas import tpu as pltpu


def _residual_block_kernel(*refs, matmul_dtype, has_halo):
  if has_halo:
    xc_ref, xt_ref, xb_ref, w1_ref, w2_ref, bnp_ref, alpha_ref, o_ref = refs
  else:
    xc_ref, w1_ref, w2_ref, bnp_ref, alpha_ref, o_ref = refs
  BN, TH, W, C = o_ref.shape

  # Hoisted boundary masks, shared by both convs (JAX does not CSE iotas).
  col = lax.broadcasted_iota(jnp.int32, (1, W, 1), 1)
  col_lo = col > 0                       # a left neighbour x[w-1] exists
  col_hi = col < W - 1                   # a right neighbour x[w+1] exists
  row = lax.broadcasted_iota(jnp.int32, (TH + 2, 1, 1), 0)

  def conv3x3(xin, w_ref):
    # xin: (BN*r_in, W, C) f32 window with a 1-row halo per image on each side.
    # One wide dot: K = 3C (kx taps fused on lanes), N = 3C (ky taps fused on
    # output columns); the three ky column blocks are then combined with
    # W-sublane-shifted adds.  Returns (BN, r_in - 2, W, C) f32.
    m3 = xin.shape[0]
    r_in = m3 // BN
    x_m1 = jnp.where(col_lo, pltpu.roll(xin, shift=1, axis=1), 0.0)
    x_p1 = jnp.where(col_hi, pltpu.roll(xin, shift=W - 1, axis=1), 0.0)
    xcat = jnp.concatenate([x_m1.astype(matmul_dtype),
                            xin.astype(matmul_dtype),
                            x_p1.astype(matmul_dtype)], axis=-1)   # (m3, W, 3C)
    res = jnp.dot(xcat.reshape(m3 * W, 3 * C), w_ref[...],
                  preferred_element_type=jnp.float32)              # (m3*W, 3C)
    res = res.reshape(BN, r_in, W, 3 * C)
    r_out = r_in - 2
    return (res[:, 0:r_out, :, 0:C]
            + res[:, 1:r_out + 1, :, C:2 * C]
            + res[:, 2:r_out + 2, :, 2 * C:3 * C])

  xc32 = xc_ref[...]                                    # (BN, TH, W, C) f32
  if has_halo:
    i = pl.program_id(1)
    T = pl.num_programs(1)
    not_first = i > 0
    not_last = i < T - 1
    top = xt_ref[...] * not_first.astype(jnp.float32)   # zeros above the image
    bot = xb_ref[...] * not_last.astype(jnp.float32)    # zeros below the image
    keep = jnp.logical_and(jnp.logical_or(not_first, row > 0),
                           jnp.logical_or(not_last, row < TH + 1))
  else:
    top = jnp.zeros((BN, 2, W, C), jnp.float32)
    bot = jnp.zeros((BN, 2, W, C), jnp.float32)
    keep = jnp.logical_and(row > 0, row < TH + 1)

  # (BN, TH+4, W, C) input window, flattened to merge all images into one M.
  xw = jnp.concatenate([top, xc32, bot], axis=1).reshape(BN * (TH + 4), W, C)

  # conv1 + bn1 + PReLU over TH+2 rows (keeps a 1-row halo for conv2).
  inter = conv3x3(xw, w1_ref)                           # (BN, TH+2, W, C) f32
  inter = inter * bnp_ref[0:1, :] + bnp_ref[1:2, :]
  alpha = alpha_ref[0]
  inter = jnp.where(inter >= 0, inter, alpha * inter)
  # conv2 sees zeros outside the image: mask the out-of-image halo rows.
  inter = jnp.where(keep, inter, 0.0)

  # conv2 + bn2 + residual.
  out = conv3x3(inter.reshape(BN * (TH + 2), W, C), w2_ref)   # (BN, TH, W, C)
  out = out * bnp_ref[2:3, :] + bnp_ref[3:4, :]
  o_ref[...] = (out + xc32).astype(o_ref.dtype)


def _fold_bn(gamma, beta, mean, var, eps=1e-5):
  scale = gamma / jnp.sqrt(var + eps)
  bias = beta - mean * scale
  return scale, bias


def _prep_conv_weight(w, matmul_dtype):
  # PyTorch (Cout, Cin, kH, kW) -> (kH, kW, Cin, Cout)
  w = jnp.transpose(w, (2, 3, 1, 0))                               # (3,3,C,C)
  # kx taps fused along the K axis, matching xcat = [x(w-1), x(w), x(w+1)].
  wk = jnp.concatenate([w[:, 0], w[:, 1], w[:, 2]], axis=1)        # (3,3C,C)
  # ky taps fused along the output-column (N) axis: [W_ky0 | W_ky1 | W_ky2].
  wide = jnp.concatenate([wk[0], wk[1], wk[2]], axis=-1)           # (3C,3C)
  return wide.astype(matmul_dtype)


def _even_divisors(n):
  return [d for d in range(2, n + 1, 2) if n % d == 0]


def _choose_blocks(N, H, W, C, budget_bytes=20 * 1024 * 1024):
  """Pick (batch_block, tile_h): biggest grid steps that fit the VMEM budget.

  The budget is sized for v7x (64 MiB / TensorCore VMEM, 32 MiB scoped
  default); v5e/v6e (128 MiB) simply get more headroom.  The per-pixel staging
  estimate counts double-buffered f32 in/out blocks, the f32 window and
  shifted copies, the bf16 xcat, the f32 (3C-wide) dot result and the f32
  intermediate, including lane padding to 128.
  """
  cp = ((C + 127) // 128) * 128
  c3p = ((3 * C + 127) // 128) * 128
  bytes_per_pixel = 32 * cp + 8 * c3p
  per_image = H * W * bytes_per_pixel

  if per_image <= budget_bytes:
    th = H
    cap = budget_bytes // per_image
    bn = max(d for d in range(1, N + 1) if N % d == 0 and d <= cap)
  else:
    bn = 1
    fits = [d for d in _even_divisors(H)
            if (d + 4) * W * bytes_per_pixel <= budget_bytes]
    if fits:
      th = max(fits)
    elif _even_divisors(H):
      th = min(_even_divisors(H))
    else:
      th = H  # TODO(synk): odd / prime H with huge images needs ragged tiling.

  t = H // th
  # Prefer an even number of grid steps so v7x's two TensorCores share evenly.
  if ((N // bn) * t) % 2 == 1 and bn % 2 == 0:
    bn //= 2
  return bn, th


@functools.partial(jax.jit,
                   static_argnames=("tile_h", "batch_block", "matmul_dtype"))
def residual_block_pallas(x_nchw, params, *, tile_h=None, batch_block=None,
                          matmul_dtype=jnp.bfloat16):
  """x_nchw: (N, C, H, W) float32. Returns (N, C, H, W) float32."""
  x_nchw = x_nchw.astype(jnp.float32)
  N, C, H, W = x_nchw.shape
  assert W % 8 == 0, f"W={W} must be a multiple of 8 (sublane-aligned merges)"

  bn_auto, th_auto = _choose_blocks(N, H, W, C)
  TH = int(tile_h) if tile_h is not None else th_auto
  BNB = int(batch_block) if batch_block is not None else bn_auto
  assert H % TH == 0 and N % BNB == 0, (H, TH, N, BNB)
  T = H // TH
  if T > 1:
    assert TH % 2 == 0, "row tiles must be even when H is split into tiles"
  has_halo = T > 1

  # NCHW -> NHWC -> (N, T, TH, W, C): channels on the 128-lane axis.
  x = jnp.transpose(x_nchw, (0, 2, 3, 1)).reshape(N, T, TH, W, C)

  w1 = _prep_conv_weight(params["w1"], matmul_dtype)
  w2 = _prep_conv_weight(params["w2"], matmul_dtype)
  s1, b1 = _fold_bn(params["bn1_gamma"], params["bn1_beta"],
                    params["bn1_mean"], params["bn1_var"])
  s2, b2 = _fold_bn(params["bn2_gamma"], params["bn2_beta"],
                    params["bn2_mean"], params["bn2_var"])
  bnp = jnp.stack([s1, b1, s2, b2], axis=0).astype(jnp.float32)    # (4, C)
  alpha = params["prelu_alpha"].reshape(1).astype(jnp.float32)     # SMEM scalar

  center_spec = pl.BlockSpec((BNB, None, TH, W, C),
                             lambda nb, t: (nb, t, 0, 0, 0))
  w_spec = pl.BlockSpec((3 * C, 3 * C), lambda nb, t: (0, 0))      # resident
  bnp_spec = pl.BlockSpec((4, C), lambda nb, t: (0, 0))            # resident
  alpha_spec = pl.BlockSpec(memory_space=pltpu.MemorySpace.SMEM)

  if has_halo:
    top_blk = TH // 2 - 1   # 2-row block holding a tile's last two rows
    top_spec = pl.BlockSpec(
        (BNB, None, 2, W, C),
        lambda nb, t: (nb, jnp.maximum(t - 1, 0), top_blk, 0, 0))
    bot_spec = pl.BlockSpec(
        (BNB, None, 2, W, C),
        lambda nb, t: (nb, jnp.minimum(t + 1, T - 1), 0, 0, 0))
    in_specs = [center_spec, top_spec, bot_spec,
                w_spec, w_spec, bnp_spec, alpha_spec]
    args = (x, x, x, w1, w2, bnp, alpha)
  else:
    in_specs = [center_spec, w_spec, w_spec, bnp_spec, alpha_spec]
    args = (x, w1, w2, bnp, alpha)

  out = pl.pallas_call(
      functools.partial(_residual_block_kernel,
                        matmul_dtype=matmul_dtype, has_halo=has_halo),
      grid=(N // BNB, T),
      in_specs=in_specs,
      out_specs=pl.BlockSpec((BNB, None, TH, W, C),
                             lambda nb, t: (nb, t, 0, 0, 0)),
      out_shape=jax.ShapeDtypeStruct((N, T, TH, W, C), jnp.float32),
      compiler_params=pltpu.CompilerParams(
          dimension_semantics=("parallel", "parallel"),
          vmem_limit_bytes=40 * 1024 * 1024),
  )(*args)

  out = out.reshape(N, H, W, C)
  return jnp.transpose(out, (0, 3, 1, 2))                 # back to NCHW


def residual_block_reference(x_nchw, params):
  """Plain-JAX reference matching the PyTorch module (eval-mode BN)."""
  dn = ("NCHW", "OIHW", "NCHW")

  def conv(x, w):
    return lax.conv_general_dilated(x, w, (1, 1), "SAME",
                                    dimension_numbers=dn,
                                    precision=lax.Precision.HIGHEST)

  def bn(x, g, b, m, v, eps=1e-5):
    g = g.reshape(1, -1, 1, 1); b = b.reshape(1, -1, 1, 1)
    m = m.reshape(1, -1, 1, 1); v = v.reshape(1, -1, 1, 1)
    return g * (x - m) / jnp.sqrt(v + eps) + b

  out = conv(x_nchw, params["w1"])
  out = bn(out, params["bn1_gamma"], params["bn1_beta"],
           params["bn1_mean"], params["bn1_var"])
  a = params["prelu_alpha"][0]
  out = jnp.where(out >= 0, out, a * out)
  out = conv(out, params["w2"])
  out = bn(out, params["bn2_gamma"], params["bn2_beta"],
           params["bn2_mean"], params["bn2_var"])
  return out + x_nchw


def make_params(key, channels):
  ks = jax.random.split(key, 8)
  C = channels
  return {
      # Conv2d(C, C, 3, 1, 1, bias=False): weight shape (Cout, Cin, 3, 3)
      "w1": jax.random.normal(ks[0], (C, C, 3, 3), jnp.float32) * 0.1,
      "w2": jax.random.normal(ks[1], (C, C, 3, 3), jnp.float32) * 0.1,
      # BatchNorm2d(C): gamma, beta, running_mean, running_var
      "bn1_gamma": 1.0 + 0.1 * jax.random.normal(ks[2], (C,), jnp.float32),
      "bn1_beta": 0.1 * jax.random.normal(ks[3], (C,), jnp.float32),
      "bn1_mean": 0.05 * jax.random.normal(ks[4], (C,), jnp.float32),
      "bn1_var": jnp.abs(1.0 + 0.1 * jax.random.normal(ks[5], (C,), jnp.float32)),
      "bn2_gamma": 1.0 + 0.1 * jax.random.normal(ks[6], (C,), jnp.float32),
      "bn2_beta": 0.1 * jax.random.normal(ks[7], (C,), jnp.float32),
      "bn2_mean": jnp.zeros((C,), jnp.float32),
      "bn2_var": jnp.ones((C,), jnp.float32),
      # PReLU(): single shared alpha, PyTorch default init 0.25
      "prelu_alpha": jnp.array([0.25], jnp.float32),
  }


if __name__ == "__main__":
  # --- Config 1: small toy shape; default blocking = whole images per step.
  N, C, H, W = 2, 8, 16, 16
  kx, kp = jax.random.split(jax.random.PRNGKey(0))
  x = jax.random.normal(kx, (N, C, H, W), jnp.float32)
  params = make_params(kp, C)
  ref = residual_block_reference(x, params)

  out_f32 = jax.block_until_ready(
      residual_block_pallas(x, params, matmul_dtype=jnp.float32))
  assert out_f32.shape == (N, C, H, W)
  err = float(jnp.max(jnp.abs(out_f32 - ref)))
  assert jnp.allclose(out_f32, ref, atol=1e-4, rtol=1e-4), f"f32 err={err}"

  out_bf = jax.block_until_ready(residual_block_pallas(x, params))
  err_bf = float(jnp.max(jnp.abs(out_bf - ref)))
  assert jnp.allclose(out_bf, ref, atol=0.15, rtol=0.05), f"bf16 err={err_bf}"

  # Forced row tiling (T=2) exercises the halo path.
  out_halo = jax.block_until_ready(
      residual_block_pallas(x, params, tile_h=8, batch_block=1,
                            matmul_dtype=jnp.float32))
  err_h = float(jnp.max(jnp.abs(out_halo - ref)))
  assert jnp.allclose(out_halo, ref, atol=1e-4, rtol=1e-4), f"halo err={err_h}"

  # --- Config 2: realistic SRGAN channel count (C=64), batch-blocked steps.
  N2, C2, H2, W2 = 4, 64, 24, 24
  kx2, kp2 = jax.random.split(jax.random.PRNGKey(1))
  x2 = jax.random.normal(kx2, (N2, C2, H2, W2), jnp.float32)
  params2 = make_params(kp2, C2)
  ref2 = residual_block_reference(x2, params2)

  out2_f32 = jax.block_until_ready(
      residual_block_pallas(x2, params2, matmul_dtype=jnp.float32))
  err2 = float(jnp.max(jnp.abs(out2_f32 - ref2)))
  assert jnp.allclose(out2_f32, ref2, atol=1e-3, rtol=1e-3), f"f32 err={err2}"

  out2_bf = jax.block_until_ready(residual_block_pallas(x2, params2))
  err2_bf = float(jnp.max(jnp.abs(out2_bf - ref2)))
  assert jnp.allclose(out2_bf, ref2, atol=0.35, rtol=0.05), f"bf16 err={err2_bf}"

  # Combined batch-block + row-tile (halo) path.
  out2_mix = jax.block_until_ready(
      residual_block_pallas(x2, params2, tile_h=12, batch_block=2,
                            matmul_dtype=jnp.float32))
  err2_m = float(jnp.max(jnp.abs(out2_mix - ref2)))
  assert jnp.allclose(out2_mix, ref2, atol=1e-3, rtol=1e-3), f"mix err={err2_m}"

  print("KERNEL_OK")
</pallas_src>

<mosaic_0001>
module attributes {stable_mosaic.version = 11 : i64} {
  func.func @_residual_block_kernel(%arg0: i32, %arg1: i32, %arg2: memref<1x1x16x16x8xf32, #tpu.memory_space<vmem>>, %arg3: memref<24x24xf32, #tpu.memory_space<vmem>>, %arg4: memref<24x24xf32, #tpu.memory_space<vmem>>, %arg5: memref<4x8xf32, #tpu.memory_space<vmem>>, %arg6: memref<1xf32, #tpu.memory_space<smem>>, %arg7: memref<1x1x16x16x8xf32, #tpu.memory_space<vmem>>) attributes {dimension_semantics = [#tpu.dimension_semantics<parallel>, #tpu.dimension_semantics<parallel>], iteration_bounds = array<i64: 2, 1>, scalar_prefetch = 0 : i64, scratch_operands = 0 : i64, tpu.core_type = #tpu.core_type<tc>, window_params = [{transform_indices = @transform_0, window_bounds = array<i64: 1, 1, 16, 16, 8>}, {pipeline_mode = #tpu.pipeline_mode<synchronous>, transform_indices = @transform_1, window_bounds = array<i64: 24, 24>}, {pipeline_mode = #tpu.pipeline_mode<synchronous>, transform_indices = @transform_2, window_bounds = array<i64: 24, 24>}, {pipeline_mode = #tpu.pipeline_mode<synchronous>, transform_indices = @transform_3, window_bounds = array<i64: 4, 8>}, {transform_indices = @transform_4, window_bounds = array<i64: 1>}, {transform_indices = @transform_5, window_bounds = array<i64: 1, 1, 16, 16, 8>}]} {
    %0 = tpu.iota {dimensions = array<i32: 1>} : vector<1x16x1xi32>
    %c0_i32 = arith.constant 0 : i32
    %1 = vector.broadcast %c0_i32 : i32 to vector<1x16x1xi32>
    %2 = arith.cmpi sgt, %0, %1 : vector<1x16x1xi32>
    %c15_i32 = arith.constant 15 : i32
    %3 = vector.broadcast %c15_i32 : i32 to vector<1x16x1xi32>
    %4 = arith.cmpi slt, %0, %3 : vector<1x16x1xi32>
    %5 = tpu.iota {dimensions = array<i32: 0>} : vector<18x1x1xi32>
    %c0 = arith.constant 0 : index
    %c0_0 = arith.constant 0 : index
    %c0_1 = arith.constant 0 : index
    %c0_2 = arith.constant 0 : index
    %c0_3 = arith.constant 0 : index
    %6 = vector.load %arg2[%c0, %c0_0, %c0_1, %c0_2, %c0_3] : memref<1x1x16x16x8xf32, #tpu.memory_space<vmem>>, vector<1x1x16x16x8xf32>
    %7 = vector.shape_cast %6 : vector<1x1x16x16x8xf32> to vector<1x16x16x8xf32>
    %cst = arith.constant 0.000000e+00 : f32
    %8 = vector.broadcast %cst : f32 to vector<1x2x16x8xf32>
    %cst_4 = arith.constant 0.000000e+00 : f32
    %9 = vector.broadcast %cst_4 : f32 to vector<1x2x16x8xf32>
    %c0_i32_5 = arith.constant 0 : i32
    %10 = vector.broadcast %c0_i32_5 : i32 to vector<18x1x1xi32>
    %11 = arith.cmpi sgt, %5, %10 : vector<18x1x1xi32>
    %c17_i32 = arith.constant 17 : i32
    %12 = vector.broadcast %c17_i32 : i32 to vector<18x1x1xi32>
    %13 = arith.cmpi slt, %5, %12 : vector<18x1x1xi32>
    %14 = arith.andi %11, %13 : vector<18x1x1xi1>
    %15 = tpu.concatenate %8, %7, %9 in 1 : vector<1x2x16x8xf32>, vector<1x16x16x8xf32>, vector<1x2x16x8xf32> -> vector<1x20x16x8xf32>
    %16 = vector.shape_cast %15 : vector<1x20x16x8xf32> to vector<20x16x8xf32>
    %c1_i32 = arith.constant 1 : i32
    %17 = tpu.dynamic_rotate %16 by %c1_i32 dim 1 : vector<20x16x8xf32>, i32 -> vector<20x16x8xf32>
    %cst_6 = arith.constant 0.000000e+00 : f32
    %18 = vector.shape_cast %2 : vector<1x16x1xi1> to vector<1x16x1xi1>
    %19 = vector.broadcast %18 : vector<1x16x1xi1> to vector<20x16x8xi1>
    %20 = vector.broadcast %cst_6 : f32 to vector<20x16x8xf32>
    %21 = arith.select %19, %17, %20 : vector<20x16x8xi1>, vector<20x16x8xf32>
    %c15_i32_7 = arith.constant 15 : i32
    %22 = tpu.dynamic_rotate %16 by %c15_i32_7 dim 1 : vector<20x16x8xf32>, i32 -> vector<20x16x8xf32>
    %cst_8 = arith.constant 0.000000e+00 : f32
    %23 = vector.shape_cast %4 : vector<1x16x1xi1> to vector<1x16x1xi1>
    %24 = vector.broadcast %23 : vector<1x16x1xi1> to vector<20x16x8xi1>
    %25 = vector.broadcast %cst_8 : f32 to vector<20x16x8xf32>
    %26 = arith.select %24, %22, %25 : vector<20x16x8xi1>, vector<20x16x8xf32>
    %27 = tpu.concatenate %21, %16, %26 in 2 : vector<20x16x8xf32>, vector<20x16x8xf32>, vector<20x16x8xf32> -> vector<20x16x24xf32>
    %28 = vector.shape_cast %27 : vector<20x16x24xf32> to vector<320x24xf32>
    %c0_9 = arith.constant 0 : index
    %c0_10 = arith.constant 0 : index
    %29 = vector.load %arg3[%c0_9, %c0_10] : memref<24x24xf32, #tpu.memory_space<vmem>>, vector<24x24xf32>
    %cst_11 = arith.constant dense<0.000000e+00> : vector<320x24xf32>
    %30 = tpu.matmul %28, %29, %cst_11 {dimension_numbers = #tpu.dot_dimension_numbers<[1], [0], [0], [1], [0, 0, 1, 1], [], []>} : vector<320x24xf32>, vector<24x24xf32>, vector<320x24xf32> -> vector<320x24xf32>
    %31 = vector.shape_cast %30 : vector<320x24xf32> to vector<1x20x16x24xf32>
    %32 = vector.extract_strided_slice %31 {offsets = [0, 0, 0, 0], sizes = [1, 18, 16, 8], strides = [1, 1, 1, 1]} : vector<1x20x16x24xf32> to vector<1x18x16x8xf32>
    %33 = vector.extract_strided_slice %31 {offsets = [0, 1, 0, 8], sizes = [1, 18, 16, 8], strides = [1, 1, 1, 1]} : vector<1x20x16x24xf32> to vector<1x18x16x8xf32>
    %34 = arith.addf %32, %33 : vector<1x18x16x8xf32>
    %35 = vector.extract_strided_slice %31 {offsets = [0, 2, 0, 16], sizes = [1, 18, 16, 8], strides = [1, 1, 1, 1]} : vector<1x20x16x24xf32> to vector<1x18x16x8xf32>
    %36 = arith.addf %34, %35 : vector<1x18x16x8xf32>
    %c0_12 = arith.constant 0 : index
    %c0_13 = arith.constant 0 : index
    %37 = vector.load %arg5[%c0_12, %c0_13] : memref<4x8xf32, #tpu.memory_space<vmem>>, vector<1x8xf32>
    %38 = vector.shape_cast %37 : vector<1x8xf32> to vector<1x1x1x8xf32>
    %39 = vector.broadcast %38 : vector<1x1x1x8xf32> to vector<1x18x16x8xf32>
    %40 = arith.mulf %36, %39 : vector<1x18x16x8xf32>
    %c1 = arith.constant 1 : index
    %c0_14 = arith.constant 0 : index
    %41 = vector.load %arg5[%c1, %c0_14] : memref<4x8xf32, #tpu.memory_space<vmem>>, vector<1x8xf32>
    %42 = vector.shape_cast %41 : vector<1x8xf32> to vector<1x1x1x8xf32>
    %43 = vector.broadcast %42 : vector<1x1x1x8xf32> to vector<1x18x16x8xf32>
    %44 = arith.addf %40, %43 : vector<1x18x16x8xf32>
    %c0_15 = arith.constant 0 : index
    %45 = memref.load %arg6[%c0_15] : memref<1xf32, #tpu.memory_space<smem>>
    %cst_16 = arith.constant 0.000000e+00 : f32
    %46 = vector.broadcast %cst_16 : f32 to vector<1x18x16x8xf32>
    %47 = arith.cmpf oge, %44, %46 : vector<1x18x16x8xf32>
    %48 = vector.broadcast %45 : f32 to vector<1x18x16x8xf32>
    %49 = arith.mulf %48, %44 : vector<1x18x16x8xf32>
    %50 = arith.select %47, %44, %49 : vector<1x18x16x8xi1>, vector<1x18x16x8xf32>
    %cst_17 = arith.constant 0.000000e+00 : f32
    %51 = vector.shape_cast %14 : vector<18x1x1xi1> to vector<1x18x1x1xi1>
    %52 = vector.broadcast %51 : vector<1x18x1x1xi1> to vector<1x18x16x8xi1>
    %53 = vector.broadcast %cst_17 : f32 to vector<1x18x16x8xf32>
    %54 = arith.select %52, %50, %53 : vector<1x18x16x8xi1>, vector<1x18x16x8xf32>
    %55 = vector.shape_cast %54 : vector<1x18x16x8xf32> to vector<18x16x8xf32>
    %c1_i32_18 = arith.constant 1 : i32
    %56 = tpu.dynamic_rotate %55 by %c1_i32_18 dim 1 : vector<18x16x8xf32>, i32 -> vector<18x16x8xf32>
    %cst_19 = arith.constant 0.000000e+00 : f32
    %57 = vector.shape_cast %2 : vector<1x16x1xi1> to vector<1x16x1xi1>
    %58 = vector.broadcast %57 : vector<1x16x1xi1> to vector<18x16x8xi1>
    %59 = vector.broadcast %cst_19 : f32 to vector<18x16x8xf32>
    %60 = arith.select %58, %56, %59 : vector<18x16x8xi1>, vector<18x16x8xf32>
    %c15_i32_20 = arith.constant 15 : i32
    %61 = tpu.dynamic_rotate %55 by %c15_i32_20 dim 1 : vector<18x16x8xf32>, i32 -> vector<18x16x8xf32>
    %cst_21 = arith.constant 0.000000e+00 : f32
    %62 = vector.shape_cast %4 : vector<1x16x1xi1> to vector<1x16x1xi1>
    %63 = vector.broadcast %62 : vector<1x16x1xi1> to vector<18x16x8xi1>
    %64 = vector.broadcast %cst_21 : f32 to vector<18x16x8xf32>
    %65 = arith.select %63, %61, %64 : vector<18x16x8xi1>, vector<18x16x8xf32>
    %66 = tpu.concatenate %60, %55, %65 in 2 : vector<18x16x8xf32>, vector<18x16x8xf32>, vector<18x16x8xf32> -> vector<18x16x24xf32>
    %67 = vector.shape_cast %66 : vector<18x16x24xf32> to vector<288x24xf32>
    %c0_22 = arith.constant 0 : index
    %c0_23 = arith.constant 0 : index
    %68 = vector.load %arg4[%c0_22, %c0_23] : memref<24x24xf32, #tpu.memory_space<vmem>>, vector<24x24xf32>
    %cst_24 = arith.constant dense<0.000000e+00> : vector<288x24xf32>
    %69 = tpu.matmul %67, %68, %cst_24 {dimension_numbers = #tpu.dot_dimension_numbers<[1], [0], [0], [1], [0, 0, 1, 1], [], []>} : vector<288x24xf32>, vector<24x24xf32>, vector<288x24xf32> -> vector<288x24xf32>
    %70 = vector.shape_cast %69 : vector<288x24xf32> to vector<1x18x16x24xf32>
    %71 = vector.extract_strided_slice %70 {offsets = [0, 0, 0, 0], sizes = [1, 16, 16, 8], strides = [1, 1, 1, 1]} : vector<1x18x16x24xf32> to vector<1x16x16x8xf32>
    %72 = vector.extract_strided_slice %70 {offsets = [0, 1, 0, 8], sizes = [1, 16, 16, 8], strides = [1, 1, 1, 1]} : vector<1x18x16x24xf32> to vector<1x16x16x8xf32>
    %73 = arith.addf %71, %72 : vector<1x16x16x8xf32>
    %74 = vector.extract_strided_slice %70 {offsets = [0, 2, 0, 16], sizes = [1, 16, 16, 8], strides = [1, 1, 1, 1]} : vector<1x18x16x24xf32> to vector<1x16x16x8xf32>
    %75 = arith.addf %73, %74 : vector<1x16x16x8xf32>
    %c2 = arith.constant 2 : index
    %c0_25 = arith.constant 0 : index
    %76 = vector.load %arg5[%c2, %c0_25] : memref<4x8xf32, #tpu.memory_space<vmem>>, vector<1x8xf32>
    %77 = vector.shape_cast %76 : vector<1x8xf32> to vector<1x1x1x8xf32>
    %78 = vector.broadcast %77 : vector<1x1x1x8xf32> to vector<1x16x16x8xf32>
    %79 = arith.mulf %75, %78 : vector<1x16x16x8xf32>
    %c3 = arith.constant 3 : index
    %c0_26 = arith.constant 0 : index
    %80 = vector.load %arg5[%c3, %c0_26] : memref<4x8xf32, #tpu.memory_space<vmem>>, vector<1x8xf32>
    %81 = vector.shape_cast %80 : vector<1x8xf32> to vector<1x1x1x8xf32>
    %82 = vector.broadcast %81 : vector<1x1x1x8xf32> to vector<1x16x16x8xf32>
    %83 = arith.addf %79, %82 : vector<1x16x16x8xf32>
    %84 = arith.addf %83, %7 : vector<1x16x16x8xf32>
    %c0_27 = arith.constant 0 : index
    %c0_28 = arith.constant 0 : index
    %c0_29 = arith.constant 0 : index
    %c0_30 = arith.constant 0 : index
    %c0_31 = arith.constant 0 : index
    %85 = vector.load %arg7[%c0_27, %c0_28, %c0_29, %c0_30, %c0_31] : memref<1x1x16x16x8xf32, #tpu.memory_space<vmem>>, vector<1x1x16x16x8xf32>
    %86 = vector.shape_cast %85 : vector<1x1x16x16x8xf32> to vector<1x16x16x8xf32>
    %87 = vector.shape_cast %84 : vector<1x16x16x8xf32> to vector<1x1x16x16x8xf32>
    tpu.vector_store %arg7[%c0_27, %c0_28, %c0_29, %c0_30, %c0_31], %87 {strides = array<i32>} : memref<1x1x16x16x8xf32, #tpu.memory_space<vmem>>, vector<1x1x16x16x8xf32>,
    return
  }
  func.func @transform_0(%arg0: i32, %arg1: i32) -> (i32, i32, i32, i32, i32) {
    %c0_i32 = arith.constant 0 : i32
    %c0_i32_0 = arith.constant 0 : i32
    %c0_i32_1 = arith.constant 0 : i32
    %c0_i32_2 = arith.constant 0 : i32
    return %arg0, %arg1, %c0_i32, %c0_i32_0, %c0_i32_1 : i32, i32, i32, i32, i32
  }
  func.func @transform_1(%arg0: i32, %arg1: i32) -> (i32, i32) {
    %c0_i32 = arith.constant 0 : i32
    %c0_i32_0 = arith.constant 0 : i32
    %c0_i32_1 = arith.constant 0 : i32
    return %c0_i32, %c0_i32_0 : i32, i32
  }
  func.func @transform_2(%arg0: i32, %arg1: i32) -> (i32, i32) {
    %c0_i32 = arith.constant 0 : i32
    %c0_i32_0 = arith.constant 0 : i32
    %c0_i32_1 = arith.constant 0 : i32
    return %c0_i32, %c0_i32_0 : i32, i32
  }
  func.func @transform_3(%arg0: i32, %arg1: i32) -> (i32, i32) {
    %c0_i32 = arith.constant 0 : i32
    %c0_i32_0 = arith.constant 0 : i32
    %c0_i32_1 = arith.constant 0 : i32
    return %c0_i32, %c0_i32_0 : i32, i32
  }
  func.func @transform_4(%arg0: i32, %arg1: i32) -> i32 {
    %c0_i32 = arith.constant 0 : i32
    %c0_i32_0 = arith.constant 0 : i32
    return %c0_i32 : i32
  }
  func.func @transform_5(%arg0: i32, %arg1: i32) -> (i32, i32, i32, i32, i32) {
    %c0_i32 = arith.constant 0 : i32
    %c0_i32_0 = arith.constant 0 : i32
    %c0_i32_1 = arith.constant 0 : i32
    %c0_i32_2 = arith.constant 0 : i32
    return %arg0, %arg1, %c0_i32, %c0_i32_0, %c0_i32_1 : i32, i32, i32, i32, i32
  }
}

</mosaic_0001>

<bundles_post_ra>
// kernel: residual_block_pallas.1
= control target key start
LH: loop header
LB: loop body
LE: loop exit
PB: predicated region body
PF: predicated region fallthrough
CT: control target
= control target key end

     0   :  { %s3679_s20 = smov 0   ;;  %s3681_s21 = smov 0   ;;  %s5520_s0 = inlined_call_operand.vmem [shape: f32[2,1,16,16,8], index: 0, kind: input, shape index: {}]   ;;  %s5521_s1 = inlined_call_operand.vmem [shape: f32[24,24], index: 1, kind: input, shape index: {}]   ;;  %s5522_s2 = inlined_call_operand.vmem [shape: f32[24,24], index: 2, kind: input, shape index: {}]   ;;  %s5523_s3 = inlined_call_operand.vmem [shape: f32[4,8], index: 3, kind: input, shape index: {}]   ;;  %s5524_s4 = inlined_call_operand.<no memory space> [shape: f32[1], index: 4, kind: input, shape index: {}]   ;;  %s5525_s5 = inlined_call_operand.vmem [shape: f32[2,1,16,16,8], index: 5, kind: output, shape index: {}]  }
   0x1   :  { %10 = sst [smem:[#allocation2]] %s5524_s4  ;;  %s3683_s22 = smov 0  }
   0x2 LB: > { %s28_s4 = sadd.s32 1, %s3635_s21  ;;  %p3226_p0 = scmp.ge.s32.totalorder %s3639_s22, 1  ;;  %s3639_s22 = sphi %s3683_s22, %s16_s22   ;;  %s3635_s21 = sphi %s3681_s21, %s5527_s21   ;;  %s3631_s20 = sphi %s3679_s20, %s5526_s20  }
   0x3   : > { %p30_p1 = scmp.ge.s32.totalorder %s28_s4, 2  ;;  %p208_p2 = scmp.lt.s32.totalorder %s3639_s22, 3 }
   0x5   : > { %s5529_s4 = smov (%p30_p1, %s28_s4), 0  ;;  %p209_p3 = pnand %p3226_p0, %p208_p2 }
   0x6   : > { %v262_v0 = vlaneseq (!%p209_p3)  ;;  %v845_v1 = vld [vmem:[%s5521_s1] sm:$0xff] (!%p209_p3)  ;;  %v846_v2 = vld [vmem:[%s5521_s1 + $0x8] sm:$0xff] (!%p209_p3)  ;;  %v3641_v3 = vmov (!%p209_p3), 0.0   ;;  %s3642_s27 = smov (!%p209_p3), 8   ;;  %p244_p4 = scmp.lt.s32.totalorder (!%p209_p3), %s3631_s20, 1  ;;  %v847_v5 = vld [vmem:[%s5521_s1 + $0x10] sm:$0xff] (!%p209_p3) }
   0x7   : > { %212 = sbr.rel (%p209_p3) target bundleno = 1079 (0x437), region = 40  ;;  %540 = vrot.lane.b32.xlu0 (!%p209_p3), %v3641_v3, %s3642_s27  ;;  %v3523_v4 = vpack.c.bf16 (!%p209_p3), %v846_v2, %v845_v1  ;;  %s3643_s30 = smov (!%p209_p3), 16   ;;  %vm775_vm2 = vcmask (!%p209_p3), 64512   ;;  %vm810_vm4 = vcmask (!%p209_p3), 130048   ;;  %vm848_vm5 = vcmask (!%p209_p3), 195584  }
   0x8   : > { %v3710_v6 = vshrl.u32 (!%p209_p3), %v262_v0, 7  ;;  %s3644_s16 = smov (!%p209_p3), 120   ;;  %s3645_s17 = smov (!%p209_p3), 112  }
   0x9   : > { %3524 = vmatprep.subr.bf16.mxu0 (!%p209_p3), %v3523_v4  ;;  %s1624_s18 = sld [smem:[#allocation2]] (!%p209_p3) }
   0xa   : > { %3526 = vmatpush3.bf16.msra.mxu0 (!%p209_p3), %v3523_v4  ;;  %v3723_v7 = vadd.s32 (!%p209_p3), 8, %v3710_v6  ;;  %vm436_vm0 = vcmp.lt.s32.totalorder (!%p209_p3), %v3710_v6, 7  ;;  %vm333_vm3 = vcmp.lt.s32.totalorder (!%p209_p3), %v3710_v6, 1  ;;  %vm265_vm6 = vcmp.gt.s32.totalorder (!%p209_p3), %v3710_v6, 0 }
   0xb   : > { %3561 = vrot.lane.b32.xlu0 (!%p209_p3), %v3641_v3, %s3643_s30  ;;  %3401 = vmatprep.subr.mxu0 (!%p209_p3), %v847_v5 }
   0xc   : > { %vm268_vm1 = vcmp.lt.s32.totalorder (!%p209_p3), %v3723_v7, 15 }
   0xe   : > { %s5531_s20 = smov (!%p244_p4, %s3631_s20), 1  ;;  %3402 = vmatpush3.msra.mxu0 %v847_v5 }
   0xf   : > { %s3313_s6 = sshll.u32 %s5531_s20, 8 }
  0x10   : > { %s3720_s9 = scalar_lea.vmem %s5520_s0, %s3313_s6  ;;  %s5322_s8 = scalar_lea.vmem %s5525_s5, %s3313_s6 }
  0x11   : > { %v3726_v8 = vld [vmem:[%s3720_s9] sm:$0xff]  ;;  %v3729_v9 = vld [vmem:[%s3720_s9 + $0x8] sm:$0xff]  ;;  %v3737_v12 = vld [vmem:[%s3720_s9 + $0x10] sm:$0xff] }
  0x12   : > { %542 = vrot.lane.b32.xlu1 %v3726_v8, %s3642_s27  ;;  %v404_v10 = vrot.slane %v3726_v8, 1  ;;  %v420_v11 = vrot.slane %v3729_v9, 1  ;;  %v3740_v13 = vld [vmem:[%s3720_s9 + $0x18] sm:$0xff]  ;;  %v405_v16 = vrot.slane %v3737_v12, 1  ;;  %v3760_v20 = vld [vmem:[%s3720_s9 + $0x20] sm:$0xff]  ;;  %v3763_v21 = vld [vmem:[%s3720_s9 + $0x28] sm:$0xff] }
  0x13   : > { %v421_v17 = vrot.slane %v3740_v13, 1  ;;  %v406_v23 = vrot.slane %v3760_v20, 1  ;;  %v422_v24 = vrot.slane %v3763_v21, 1  ;;  %v3780_v27 = vld [vmem:[%s3720_s9 + $0x30] sm:$0xff]  ;;  %v3783_v28 = vld [vmem:[%s3720_s9 + $0x38] sm:$0xff]  ;;  %v3800_v34 = vld [vmem:[%s3720_s9 + $0x40] sm:$0xff] }
  0x14   : > { %v437_v14 = vsel %vm436_vm0, %v404_v10, %v420_v11  ;;  %v453_v15 = vsel %vm436_vm0, %v420_v11, %v404_v10  ;;  %v407_v30 = vrot.slane %v3780_v27, 1  ;;  %v423_v31 = vrot.slane %v3783_v28, 1  ;;  %v3803_v35 = vld [vmem:[%s3720_s9 + $0x48] sm:$0xff]  ;;  %v3820_v41 = vld [vmem:[%s3720_s9 + $0x50] sm:$0xff]  ;;  %v3823_v42 = vld [vmem:[%s3720_s9 + $0x58] sm:$0xff] }
  0x15   : > { %677 = vrot.lane.b32.xlu0 %v437_v14, %s3643_s30  ;;  %v476_v18 = vsel %vm268_vm1, %v453_v15, 0.0  ;;  %v438_v19 = vsel %vm436_vm0, %v405_v16, %v421_v17  ;;  %v454_v22 = vsel %vm436_vm0, %v421_v17, %v405_v16  ;;  %v439_v26 = vsel %vm436_vm0, %v406_v23, %v422_v24  ;;  %v3840_v48 = vld [vmem:[%s3720_s9 + $0x60] sm:$0xff]  ;;  %v3843_v49 = vld [vmem:[%s3720_s9 + $0x68] sm:$0xff]  ;;  %v3860_v55 = vld [vmem:[%s3720_s9 + $0x70] sm:$0xff] }
  0x16   : > { %544 = vrot.lane.b32.xlu1 %v3729_v9, %s3642_s27  ;;  %v478_v25 = vsel %vm268_vm1, %v454_v22, 0.0  ;;  %v455_v29 = vsel %vm436_vm0, %v422_v24, %v406_v23  ;;  %v440_v33 = vsel %vm436_vm0, %v407_v30, %v423_v31  ;;  %v456_v36 = vsel %vm436_vm0, %v423_v31, %v407_v30  ;;  %v3863_v56 = vld [vmem:[%s3720_s9 + $0x78] sm:$0xff]  ;;  %v3880_v62 = vld [vmem:[%s3720_s9 + $0x80] sm:$0xff]  ;;  %v3883_v63 = vld [vmem:[%s3720_s9 + $0x88] sm:$0xff] }
  0x17   : > { %v480_v32 = vsel %vm268_vm1, %v455_v29, 0.0  ;;  %v408_v37 = vrot.slane %v3800_v34, 1  ;;  %v424_v38 = vrot.slane %v3803_v35, 1  ;;  %v482_v39 = vsel %vm268_vm1, %v456_v36, 0.0  ;;  %v3900_v10 = vld [vmem:[%s3720_s9 + $0x90] sm:$0xff]  ;;  %v3903_v11 = vld [vmem:[%s3720_s9 + $0x98] sm:$0xff] }
  0x18   : > { %v409_v44 = vrot.slane %v3820_v41, 1  ;;  %v425_v45 = vrot.slane %v3823_v42, 1  ;;  %v410_v51 = vrot.slane %v3840_v48, 1  ;;  %v426_v52 = vrot.slane %v3843_v49, 1  ;;  %v3923_v22 = vld [vmem:[%s3720_s9 + $0xa8] sm:$0xff]  ;;  %v3940_v30 = vld [vmem:[%s3720_s9 + $0xb0] sm:$0xff] }
  0x19   : > { %546 = vrot.lane.b32.xlu0 %v3737_v12, %s3642_s27  ;;  %v441_v40 = vsel %vm436_vm0, %v408_v37, %v424_v38  ;;  %v457_v43 = vsel %vm436_vm0, %v424_v38, %v408_v37  ;;  %v411_v58 = vrot.slane %v3860_v55, 1  ;;  %v427_v59 = vrot.slane %v3863_v56, 1  ;;  %v3943_v31 = vld [vmem:[%s3720_s9 + $0xb8] sm:$0xff] }
  0x1a   : > { %679 = vrot.lane.b32.xlu1 %v476_v18, %s3643_s30  ;;  %v484_v46 = vsel %vm268_vm1, %v457_v43, 0.0  ;;  %v442_v47 = vsel %vm436_vm0, %v409_v44, %v425_v45  ;;  %v458_v50 = vsel %vm436_vm0, %v425_v45, %v409_v44  ;;  %v443_v54 = vsel %vm436_vm0, %v410_v51, %v426_v52 }
  0x1b   : > { %v486_v53 = vsel %vm268_vm1, %v458_v50, 0.0  ;;  %v459_v57 = vsel %vm436_vm0, %v426_v52, %v410_v51  ;;  %v444_v61 = vsel %vm436_vm0, %v411_v58, %v427_v59  ;;  %v460_v0 = vsel %vm436_vm0, %v427_v59, %v411_v58  ;;  %v3980_v50 = vld [vmem:[%s3720_s9 + $0xd0] sm:$0xff]  ;;  %v3983_v51 = vld [vmem:[%s3720_s9 + $0xd8] sm:$0xff]  ;;  %v4000_v59 = vld [vmem:[%s3720_s9 + $0xe0] sm:$0xff] }
  0x1c   : > { %v488_v60 = vsel %vm268_vm1, %v459_v57, 0.0  ;;  %v412_v1 = vrot.slane %v3880_v62, 1  ;;  %v428_v2 = vrot.slane %v3883_v63, 1  ;;  %v490_v4 = vsel %vm268_vm1, %v460_v0, 0.0 }
  0x1d   : > { %681 = vrot.lane.b32.xlu0 %v438_v19, %s3643_s30  ;;  %v413_v15 = vrot.slane %v3900_v10, 1  ;;  %v429_v16 = vrot.slane %v3903_v11, 1  ;;  %v3920_v19 = vld [vmem:[%s3720_s9 + $0xa0] sm:$0xff]  ;;  %v431_v36 = vrot.slane %v3943_v31, 1 }
  0x1e   : > { %548 = vrot.lane.b32.xlu1 %v3740_v13, %s3642_s27  ;;  %v445_v5 = vsel %vm436_vm0, %v412_v1, %v428_v2  ;;  %v461_v14 = vsel %vm436_vm0, %v428_v2, %v412_v1  ;;  %v414_v24 = vrot.slane %v3920_v19, 1  ;;  %v418_v1 = vrot.slane %v4000_v59, 1 }
  0x1f   : > { %v492_v17 = vsel %vm268_vm1, %v461_v14, 0.0  ;;  %v446_v18 = vsel %vm436_vm0, %v413_v15, %v429_v16  ;;  %v462_v23 = vsel %vm436_vm0, %v429_v16, %v413_v15  ;;  %v317_v14 = vrot.slane %v3729_v9, 7 }
  0x20   : > { %v302_v9 = vrot.slane %v3737_v12, 7 }
  0x21   : > { %550 = vrot.lane.b32.xlu0 %v3760_v20, %s3642_s27 }
  0x22   : > { %683 = vrot.lane.b32.xlu1 %v478_v25, %s3643_s30  ;;  %v430_v25 = vrot.slane %v3923_v22, 1 }
  0x24   : > { %v447_v29 = vsel %vm436_vm0, %v414_v24, %v430_v25 }
  0x25   : > { %685 = vrot.lane.b32.xlu0 %v439_v26, %s3643_s30  ;;  %v494_v26 = vsel %vm268_vm1, %v462_v23, 0.0 }
  0x26   : > { %552 = vrot.lane.b32.xlu1 %v3763_v21, %s3642_s27 }
  0x29   : > { %554 = vrot.lane.b32.xlu0 %v3780_v27, %s3642_s27 }
  0x2a   : > { %687 = vrot.lane.b32.xlu1 %v480_v32, %s3643_s30  ;;  %v463_v32 = vsel %vm436_vm0, %v430_v25, %v414_v24  ;;  %v4029_v25 = vld [vmem:[%s3720_s9 + $0xf0] sm:$0xff] }
  0x2b   : > { %v496_v37 = vsel %vm268_vm1, %v463_v32, 0.0 }
  0x2d   : > { %689 = vrot.lane.b32.xlu0 %v440_v33, %s3643_s30  ;;  %v415_v33 = vrot.slane %v3940_v30, 1 }
  0x2e   : > { %556 = vrot.lane.b32.xlu1 %v3783_v28, %s3642_s27 }
  0x2f   : > { %v448_v38 = vsel %vm436_vm0, %v415_v33, %v431_v36  ;;  %v464_v43 = vsel %vm436_vm0, %v431_v36, %v415_v33  ;;  %v419_v36 = vrot.slane %v4029_v25, 1 }
  0x31   : > { %558 = vrot.lane.b32.xlu0 %v3800_v34, %s3642_s27 }
  0x32   : > { %691 = vrot.lane.b32.xlu1 %v482_v39, %s3643_s30  ;;  %v3960_v39 = vld [vmem:[%s3720_s9 + $0xc0] sm:$0xff] }
  0x33   : > { %v416_v44 = vrot.slane %v3960_v39, 1 }
  0x35   : > { %693 = vrot.lane.b32.xlu0 %v441_v40, %s3643_s30  ;;  %v3963_v40 = vld [vmem:[%s3720_s9 + $0xc8] sm:$0xff] }
  0x36   : > { %560 = vrot.lane.b32.xlu1 %v3803_v35, %s3642_s27  ;;  %v432_v45 = vrot.slane %v3963_v40, 1 }
  0x38   : > { %v465_v52 = vsel %vm436_vm0, %v432_v45, %v416_v44 }
  0x39   : > { %562 = vrot.lane.b32.xlu0 %v3820_v41, %s3642_s27  ;;  %v500_v57 = vsel %vm268_vm1, %v465_v52, 0.0 }
  0x3a   : > { %695 = vrot.lane.b32.xlu1 %v484_v46, %s3643_s30  ;;  %v498_v46 = vsel %vm268_vm1, %v464_v43, 0.0 }
  0x3d   : > { %697 = vrot.lane.b32.xlu0 %v442_v47, %s3643_s30  ;;  %v449_v47 = vsel %vm436_vm0, %v416_v44, %v432_v45 }
  0x3e   : > { %564 = vrot.lane.b32.xlu1 %v3823_v42, %s3642_s27 }
  0x41   : > { %566 = vrot.lane.b32.xlu0 %v3840_v48, %s3642_s27 }
  0x42   : > { %699 = vrot.lane.b32.xlu1 %v486_v53, %s3643_s30  ;;  %v417_v53 = vrot.slane %v3980_v50, 1 }
  0x45   : > { %701 = vrot.lane.b32.xlu0 %v443_v54, %s3643_s30  ;;  %v433_v54 = vrot.slane %v3983_v51, 1 }
  0x46   : > { %568 = vrot.lane.b32.xlu1 %v3843_v49, %s3642_s27 }
  0x47   : > { %v450_v58 = vsel %vm436_vm0, %v417_v53, %v433_v54 }
  0x49   : > { %570 = vrot.lane.b32.xlu0 %v3860_v55, %s3642_s27 }
  0x4a   : > { %703 = vrot.lane.b32.xlu1 %v488_v60, %s3643_s30  ;;  %v4003_v60 = vld [vmem:[%s3720_s9 + $0xe8] sm:$0xff] }
  0x4b   : > { %v434_v2 = vrot.slane %v4003_v60, 1 }
  0x4d   : > { %705 = vrot.lane.b32.xlu0 %v444_v61, %s3643_s30  ;;  %v466_v61 = vsel %vm436_vm0, %v433_v54, %v417_v53  ;;  %v467_v12 = vsel %vm436_vm0, %v434_v2, %v418_v1 }
  0x4e   : > { %572 = vrot.lane.b32.xlu1 %v3863_v56, %s3642_s27  ;;  %v504_v43 = vsel %vm268_vm1, %v467_v12, 0.0 }
  0x51   : > { %574 = vrot.lane.b32.xlu0 %v3880_v62, %s3642_s27 }
  0x52   : > { %707 = vrot.lane.b32.xlu1 %v490_v4, %s3643_s30  ;;  %v301_v4 = vrot.slane %v3726_v8, 7  ;;  %v451_v8 = vsel %vm436_vm0, %v418_v1, %v434_v2 }
  0x54   : > { %v350_v24 = vsel %vm333_vm3, %v317_v14, %v301_v4 }
  0x55   : > { %709 = vrot.lane.b32.xlu0 %v445_v5, %s3643_s30  ;;  %v502_v5 = vsel %vm268_vm1, %v466_v61, 0.0 }
  0x56   : > { %576 = vrot.lane.b32.xlu1 %v3883_v63, %s3642_s27 }
  0x59   : > { %578 = vrot.lane.b32.xlu0 %v3900_v10, %s3642_s27 }
  0x5a   : > { %711 = vrot.lane.b32.xlu1 %v492_v17, %s3643_s30 }
  0x5d   : > { %713 = vrot.lane.b32.xlu0 %v446_v18, %s3643_s30  ;;  %v318_v18 = vrot.slane %v3740_v13, 7  ;;  %v372_v13 = vsel %vm265_vm6, %v350_v24, 0.0  ;;  %v320_v24 = vrot.slane %v3783_v28, 7 }
  0x5e   : > { %580 = vrot.lane.b32.xlu1 %v3903_v11, %s3642_s27 }
  0x5f   : > { %v351_v44 = vsel %vm333_vm3, %v318_v18, %v302_v9 }
  0x60   : > { %v374_v53 = vsel %vm265_vm6, %v351_v44, 0.0  ;;  %v305_v44 = vrot.slane %v3800_v34, 7 }
  0x61   : > { %582 = vrot.lane.b32.xlu0 %v3920_v19, %s3642_s27 }
  0x62   : > { %715 = vrot.lane.b32.xlu1 %v494_v26, %s3643_s30  ;;  %v4032_v26 = vld [vmem:[%s3720_s9 + $0xf8] sm:$0xff] }
  0x65   : > { %717 = vrot.lane.b32.xlu0 %v447_v29, %s3643_s30 }
  0x66   : > { %584 = vrot.lane.b32.xlu1 %v3923_v22, %s3642_s27 }
  0x69   : > { %586 = vrot.lane.b32.xlu0 %v3940_v30, %s3642_s27 }
  0x6a   : > { %719 = vrot.lane.b32.xlu1 %v496_v37, %s3643_s30  ;;  %v435_v37 = vrot.slane %v4032_v26, 1 }
  0x6c   : > { %v452_v54 = vsel %vm436_vm0, %v419_v36, %v435_v37  ;;  %v468_v2 = vsel %vm436_vm0, %v435_v37, %v419_v36 }
  0x6d   : > { %721 = vrot.lane.b32.xlu0 %v448_v38, %s3643_s30 }
  0x6e   : > { %588 = vrot.lane.b32.xlu1 %v3943_v31, %s3642_s27 }
  0x71   : > { %590 = vrot.lane.b32.xlu0 %v3960_v39, %s3642_s27 }
  0x72   : > { %723 = vrot.lane.b32.xlu1 %v498_v46, %s3643_s30 }
  0x75   : > { %725 = vrot.lane.b32.xlu0 %v449_v47, %s3643_s30  ;;  %v334_v47 = vsel %vm333_vm3, %v301_v4, %v317_v14 }
  0x76   : > { %592 = vrot.lane.b32.xlu1 %v3963_v40, %s3642_s27 }
  0x79   : > { %594 = vrot.lane.b32.xlu0 %v3980_v50, %s3642_s27  ;;  %v541_v0 = vpop.permute.xlu0 %540 }
  0x7a   : > { %727 = vrot.lane.b32.xlu1 %v500_v57, %s3643_s30  ;;  %v776_v23 = vsel %vm775_vm2, 0.0, %v541_v0  ;;  %v303_v57 = vrot.slane %v3760_v20, 7 }
  0x7d   : > { %729 = vrot.lane.b32.xlu0 %v450_v58, %s3643_s30  ;;  %v3562_v15 = vpop.permute.xlu0 %3561  ;;  %v319_v58 = vrot.slane %v3763_v21, 7  ;;  %v506_v21 = vsel %vm268_vm1, %v468_v2, 0.0  ;;  %v322_v2 = vrot.slane %v3823_v42, 7 }
  0x7e   : > { %596 = vrot.lane.b32.xlu1 %v3983_v51, %s3642_s27  ;;  %v3564_v16 = vunpack.i.h.bf16 %v3562_v15  ;;  %v3563_v17 = vunpack.i.l.bf16 %v3562_v15 }
  0x7f   : > { %v352_v14 = vsel %vm333_vm3, %v319_v58, %v303_v57 }
  0x80   : > { %v4035_v32 = vsel %vm810_vm4, %v776_v23, %v3563_v17  ;;  %v4038_v33 = vsel %vm810_vm4, %v776_v23, %v3564_v16  ;;  %v335_v17 = vsel %vm333_vm3, %v302_v9, %v318_v18  ;;  %v304_v23 = vrot.slane %v3780_v27, 7 }
  0x81   : > { %598 = vrot.lane.b32.xlu0 %v4000_v59, %s3642_s27  ;;  %3403 = vmatprep.mubr.msk.f32.mxu0 %vm848_vm5, %v4035_v32  ;;  %v336_v27 = vsel %vm333_vm3, %v303_v57, %v319_v58 }
  0x82   : > { %731 = vrot.lane.b32.xlu1 %v502_v5, %s3643_s30  ;;  %3404 = vmatmul.mubr.msk.f32.vlgmr.msra.gmra.mrb[0].mxu0 %vm848_vm5, %v4038_v33  ;;  %v353_v18 = vsel %vm333_vm3, %v320_v24, %v304_v23  ;;  %v337_v34 = vsel %vm333_vm3, %v304_v23, %v320_v24  ;;  %v307_v23 = vrot.slane %v3840_v48, 7  ;;  %v323_v24 = vrot.slane %v3843_v49, 7 }
  0x83   : > { %3406 = vmatprep.mubr.msk.f32.mxu0 %vm848_vm5, %v4035_v32  ;;  %v378_v28 = vsel %vm265_vm6, %v353_v18, 0.0 }
  0x84   : > { %v543_v29 = vpop.permute.xlu1 %542  ;;  %v356_v18 = vsel %vm333_vm3, %v323_v24, %v307_v23 }
  0x85   : > { %733 = vrot.lane.b32.xlu0 %v451_v8, %s3643_s30  ;;  %v778_v46 = vsel %vm775_vm2, %v372_v13, %v543_v29  ;;  %v376_v8 = vsel %vm265_vm6, %v352_v14, 0.0  ;;  %v384_v49 = vsel %vm265_vm6, %v356_v18, 0.0 }
  0x86   : > { %600 = vrot.lane.b32.xlu1 %v4003_v60, %s3642_s27  ;;  %3407 = vmatmul.mubr.msk.f32.gmra.mrb[2].mxu0 %vm848_vm5, %v4038_v33 }
  0x87   : > { %v678_v38 = vpop.permute.xlu0 %677 }
  0x88   : > { %v545_v45 = vpop.permute.xlu1 %544  ;;  %v813_v52 = vsel %vm810_vm4, %v778_v46, %v678_v38 }
  0x89   : > { %602 = vrot.lane.b32.xlu0 %v4029_v25, %s3642_s27  ;;  %3409 = vmatprep.mubr.msk.f32.mxu0 %vm848_vm5, %v813_v52  ;;  %v779_v0 = vsel %vm775_vm2, %v334_v47, %v545_v45  ;;  %v321_v45 = vrot.slane %v3803_v35, 7 }
  0x8a   : > { %735 = vrot.lane.b32.xlu1 %v504_v43, %s3643_s30 }
  0x8b   : > { %v547_v61 = vpop.permute.xlu0 %546  ;;  %v354_v58 = vsel %vm333_vm3, %v321_v45, %v305_v44 }
  0x8c   : > { %v680_v1 = vpop.permute.xlu1 %679  ;;  %v780_v5 = vsel %vm775_vm2, %v374_v53, %v547_v61  ;;  %v380_v35 = vsel %vm265_vm6, %v354_v58, 0.0 }
  0x8d   : > { %v814_v4 = vsel %vm810_vm4, %v779_v0, %v680_v1  ;;  %737 = vrot.lane.b32.xlu0 %v452_v54, %s3643_s30  ;;  %v306_v1 = vrot.slane %v3820_v41, 7  ;;  %v338_v41 = vsel %vm333_vm3, %v305_v44, %v321_v45 }
  0x8e   : > { %604 = vrot.lane.b32.xlu1 %v4032_v26, %s3642_s27  ;;  %3410 = vmatmul.mubr.msk.f32.gmra.mrb[4].mxu0 %vm848_vm5, %v814_v4 }
  0x8f   : > { %v682_v20 = vpop.permute.xlu0 %681  ;;  %v339_v48 = vsel %vm333_vm3, %v306_v1, %v322_v2 }
  0x90   : > { %v549_v15 = vpop.permute.xlu1 %548  ;;  %v815_v16 = vsel %vm810_vm4, %v780_v5, %v682_v20 }
  0x91   : > { %3412 = vmatprep.mubr.msk.f32.mxu0 %vm848_vm5, %v815_v16  ;;  %v781_v12 = vsel %vm775_vm2, %v335_v17, %v549_v15  ;;  %v355_v16 = vsel %vm333_vm3, %v322_v2, %v306_v1  ;;  %3566 = vrot.lane.b32.xlu0 %v3641_v3, %s3642_s27 }
  0x92   : > { %739 = vrot.lane.b32.xlu1 %v506_v21, %s3643_s30  ;;  %v382_v42 = vsel %vm265_vm6, %v355_v16, 0.0  ;;  %v326_v16 = vrot.slane %v3903_v11, 7 }
  0x93   : > { %v551_v29 = vpop.permute.xlu0 %550 }
  0x94   : > { %v684_v13 = vpop.permute.xlu1 %683  ;;  %v782_v37 = vsel %vm775_vm2, %v376_v8, %v551_v29 }
  0x95   : > { %v816_v36 = vsel %vm810_vm4, %v781_v12, %v684_v13 }
  0x96   : > { %3413 = vmatmul.mubr.msk.f32.gmra.mrb[6].mxu0 %vm848_vm5, %v816_v36 }
  0x97   : > { %v686_v9 = vpop.permute.xlu0 %685 }
  0x98   : > { %v553_v38 = vpop.permute.xlu1 %552  ;;  %v817_v43 = vsel %vm810_vm4, %v782_v37, %v686_v9 }
  0x99   : > { %3415 = vmatprep.mubr.msk.f32.mxu0 %vm848_vm5, %v817_v43  ;;  %v783_v47 = vsel %vm775_vm2, %v336_v27, %v553_v38  ;;  %v308_v27 = vrot.slane %v3860_v55, 7  ;;  %v340_v55 = vsel %vm333_vm3, %v307_v23, %v323_v24 }
  0x9b   : > { %v555_v46 = vpop.permute.xlu0 %554 }
  0x9c   : > { %v688_v52 = vpop.permute.xlu1 %687  ;;  %v784_v54 = vsel %vm775_vm2, %v378_v28, %v555_v46  ;;  %v324_v28 = vrot.slane %v3863_v56, 7 }
  0x9d   : > { %v818_v53 = vsel %vm810_vm4, %v783_v47, %v688_v52 }
  0x9e   : > { %3416 = vmatmul.mubr.msk.f32.gmra.mrb[8].mxu0 %vm848_vm5, %v818_v53 }
  0x9f   : > { %v690_v57 = vpop.permute.xlu0 %689 }
  0xa0   : > { %v557_v61 = vpop.permute.xlu1 %556  ;;  %v819_v0 = vsel %vm810_vm4, %v784_v54, %v690_v57  ;;  %v357_v54 = vsel %vm333_vm3, %v324_v28, %v308_v27 }
  0xa1   : > { %3418 = vmatprep.mubr.msk.f32.mxu0 %vm848_vm5, %v819_v0  ;;  %v785_v5 = vsel %vm775_vm2, %v337_v34, %v557_v61  ;;  %v386_v56 = vsel %vm265_vm6, %v357_v54, 0.0  ;;  %v309_v61 = vrot.slane %v3880_v62, 7  ;;  %v325_v0 = vrot.slane %v3883_v63, 7 }
  0xa2   : > { %v341_v62 = vsel %vm333_vm3, %v308_v27, %v324_v28 }
  0xa3   : > { %v559_v4 = vpop.permute.xlu0 %558 }
  0xa4   : > { %v692_v20 = vpop.permute.xlu1 %691  ;;  %v786_v14 = vsel %vm775_vm2, %v380_v35, %v559_v4 }
  0xa5   : > { %v820_v21 = vsel %vm810_vm4, %v785_v5, %v692_v20  ;;  %v358_v20 = vsel %vm333_vm3, %v325_v0, %v309_v61 }
  0xa6   : > { %3419 = vmatmul.mubr.msk.f32.gmra.mrb[10].mxu0 %vm848_vm5, %v820_v21  ;;  %v388_v63 = vsel %vm265_vm6, %v358_v20, 0.0 }
  0xa7   : > { %v694_v15 = vpop.permute.xlu0 %693 }
  0xa8   : > { %v561_v17 = vpop.permute.xlu1 %560  ;;  %v821_v8 = vsel %vm810_vm4, %v786_v14, %v694_v15  ;;  %v310_v15 = vrot.slane %v3900_v10, 7  ;;  %v342_v10 = vsel %vm333_vm3, %v309_v61, %v325_v0  ;;  %v1878_v0 = vrot.slane %v3641_v3, 1 }
  0xa9   : > { %3421 = vmatprep.mubr.msk.f32.mxu0 %vm848_vm5, %v821_v8  ;;  %v787_v12 = vsel %vm775_vm2, %v338_v41, %v561_v17 }
  0xab   : > { %v563_v29 = vpop.permute.xlu0 %562 }
  0xac   : > { %v696_v13 = vpop.permute.xlu1 %695  ;;  %v788_v37 = vsel %vm775_vm2, %v382_v42, %v563_v29  ;;  %v359_v29 = vsel %vm333_vm3, %v326_v16, %v310_v15 }
  0xad   : > { %v822_v36 = vsel %vm810_vm4, %v787_v12, %v696_v13  ;;  %v390_v11 = vsel %vm265_vm6, %v359_v29, 0.0 }
  0xae   : > { %3422 = vmatmul.mubr.msk.f32.gmra.mrb[12].mxu0 %vm848_vm5, %v822_v36  ;;  %v311_v36 = vrot.slane %v3920_v19, 7  ;;  %v343_v19 = vsel %vm333_vm3, %v310_v15, %v326_v16 }
  0xaf   : > { %v698_v9 = vpop.permute.xlu0 %697 }
  0xb0   : > { %v565_v38 = vpop.permute.xlu1 %564  ;;  %v823_v43 = vsel %vm810_vm4, %v788_v37, %v698_v9  ;;  %v327_v37 = vrot.slane %v3923_v22, 7 }
  0xb1   : > { %3424 = vmatprep.mubr.msk.f32.mxu0 %vm848_vm5, %v823_v43  ;;  %v789_v45 = vsel %vm775_vm2, %v339_v48, %v565_v38 }
  0xb2   : > { %v360_v27 = vsel %vm333_vm3, %v327_v37, %v311_v36 }
  0xb3   : > { %v567_v44 = vpop.permute.xlu0 %566  ;;  %v392_v22 = vsel %vm265_vm6, %v360_v27, 0.0 }
  0xb4   : > { %v700_v46 = vpop.permute.xlu1 %699  ;;  %v790_v52 = vsel %vm775_vm2, %v384_v49, %v567_v44 }
  0xb5   : > { %v824_v47 = vsel %vm810_vm4, %v789_v45, %v700_v46  ;;  %v312_v45 = vrot.slane %v3940_v30, 7  ;;  %v328_v46 = vrot.slane %v3943_v31, 7  ;;  %v344_v30 = vsel %vm333_vm3, %v311_v36, %v327_v37 }
  0xb6   : > { %3425 = vmatmul.mubr.msk.f32.gmra.mrb[14].mxu0 %vm848_vm5, %v824_v47  ;;  %v315_v36 = vrot.slane %v4000_v59, 7  ;;  %v331_v37 = vrot.slane %v4003_v60, 7 }
  0xb7   : > { %v702_v53 = vpop.permute.xlu0 %701  ;;  %v345_v15 = vsel %vm333_vm3, %v312_v45, %v328_v46 }
  0xb8   : > { %v569_v57 = vpop.permute.xlu1 %568  ;;  %v825_v58 = vsel %vm810_vm4, %v790_v52, %v702_v53  ;;  %v364_v27 = vsel %vm333_vm3, %v331_v37, %v315_v36 }
  0xb9   : > { %3427 = vmatprep.mubr.msk.f32.mxu0 %vm848_vm5, %v825_v58  ;;  %v791_v35 = vsel %vm775_vm2, %v340_v55, %v569_v57  ;;  %v361_v55 = vsel %vm333_vm3, %v328_v46, %v312_v45  ;;  %v400_v60 = vsel %vm265_vm6, %v364_v27, 0.0 }
  0xba   : > { %v394_v31 = vsel %vm265_vm6, %v361_v55, 0.0 }
  0xbb   : > { %v571_v34 = vpop.permute.xlu0 %570 }
  0xbc   : > { %v704_v1 = vpop.permute.xlu1 %703  ;;  %v792_v4 = vsel %vm775_vm2, %v386_v56, %v571_v34  ;;  %v313_v34 = vrot.slane %v3960_v39, 7 }
  0xbd   : > { %v826_v2 = vsel %vm810_vm4, %v791_v35, %v704_v1  ;;  %v329_v35 = vrot.slane %v3963_v40, 7 }
  0xbe   : > { %3428 = vmatmul.mubr.msk.f32.gmra.mrb[16].mxu0 %vm848_vm5, %v826_v2 }
  0xbf   : > { %v706_v5 = vpop.permute.xlu0 %705  ;;  %v362_v39 = vsel %vm333_vm3, %v329_v35, %v313_v34 }
  0xc0   : > { %v573_v21 = vpop.permute.xlu1 %572  ;;  %v827_v14 = vsel %vm810_vm4, %v792_v4, %v706_v5  ;;  %v1951_v5 = vsel %vm268_vm1, %v1878_v0, 0.0  ;;  %v396_v16 = vsel %vm265_vm6, %v362_v39, 0.0 }
  0xc1   : > { %3430 = vmatprep.mubr.msk.f32.mxu0 %vm848_vm5, %v827_v14  ;;  %v793_v8 = vsel %vm775_vm2, %v341_v62, %v573_v21  ;;  %v4229_v14 = vpack.i.bf16 %v1951_v5, %v1878_v0 }
  0xc3   : > { %v575_v17 = vpop.permute.xlu0 %574  ;;  %3571 = vrot.lane.b32.xlu1 %v4229_v14, %s3643_s30 }
  0xc4   : > { %v708_v41 = vpop.permute.xlu1 %707  ;;  %v794_v23 = vsel %vm775_vm2, %v388_v63, %v575_v17  ;;  %v314_v17 = vrot.slane %v3980_v50, 7  ;;  %v346_v50 = vsel %vm333_vm3, %v313_v34, %v329_v35 }
  0xc5   : > { %v828_v42 = vsel %vm810_vm4, %v793_v8, %v708_v41  ;;  %v330_v8 = vrot.slane %v3983_v51, 7 }
  0xc6   : > { %3431 = vmatmul.mubr.msk.f32.gmra.mrb[18].mxu0 %vm848_vm5, %v828_v42 }
  0xc7   : > { %v710_v24 = vpop.permute.xlu0 %709  ;;  %v347_v59 = vsel %vm333_vm3, %v314_v17, %v330_v8 }
  0xc8   : > { %v577_v12 = vpop.permute.xlu1 %576  ;;  %v829_v13 = vsel %vm810_vm4, %v794_v23, %v710_v24 }
  0xc9   : > { %3433 = vmatprep.mubr.msk.f32.mxu0 %vm848_vm5, %v829_v13  ;;  %v795_v18 = vsel %vm775_vm2, %v342_v10, %v577_v12  ;;  %v363_v13 = vsel %vm333_vm3, %v330_v8, %v314_v17 }
  0xca   : > { %v398_v51 = vsel %vm265_vm6, %v363_v13, 0.0 }
  0xcb   : > { %v579_v9 = vpop.permute.xlu0 %578 }
  0xcc   : > { %v712_v38 = vpop.permute.xlu1 %711  ;;  %v796_v48 = vsel %vm775_vm2, %v390_v11, %v579_v9 }
  0xcd   : > { %v830_v43 = vsel %vm810_vm4, %v795_v18, %v712_v38 }
  0xce   : > { %3434 = vmatmul.mubr.msk.f32.gmra.mrb[20].mxu0 %vm848_vm5, %v830_v43 }
  0xcf   : > { %v714_v49 = vpop.permute.xlu0 %713 }
  0xd0   : > { %v581_v28 = vpop.permute.xlu1 %580  ;;  %v831_v44 = vsel %vm810_vm4, %v796_v48, %v714_v49 }
  0xd1   : > { %3436 = vmatprep.mubr.msk.f32.mxu0 %vm848_vm5, %v831_v44  ;;  %v797_v52 = vsel %vm775_vm2, %v343_v19, %v581_v28  ;;  %v316_v19 = vrot.slane %v4029_v25, 7  ;;  %v348_v25 = vsel %vm333_vm3, %v315_v36, %v331_v37 }
  0xd3   : > { %v583_v47 = vpop.permute.xlu0 %582 }
  0xd4   : > { %v716_v53 = vpop.permute.xlu1 %715  ;;  %v798_v57 = vsel %vm775_vm2, %v392_v22, %v583_v47  ;;  %v332_v22 = vrot.slane %v4032_v26, 7 }
  0xd5   : > { %v832_v54 = vsel %vm810_vm4, %v797_v52, %v716_v53 }
  0xd6   : > { %3437 = vmatmul.mubr.msk.f32.gmra.mrb[22].mxu0 %vm848_vm5, %v832_v54 }
  0xd7   : > { %v718_v58 = vpop.permute.xlu0 %717 }
  0xd8   : > { %v585_v56 = vpop.permute.xlu1 %584  ;;  %v833_v61 = vsel %vm810_vm4, %v798_v57, %v718_v58  ;;  %v365_v57 = vsel %vm333_vm3, %v332_v22, %v316_v19 }
  0xd9   : > { %3439 = vmatprep.mubr.msk.f32.mxu0 %vm848_vm5, %v833_v61  ;;  %v799_v2 = vsel %vm775_vm2, %v344_v30, %v585_v56  ;;  %v402_v26 = vsel %vm265_vm6, %v365_v57, 0.0 }
  0xdb   : > { %v587_v1 = vpop.permute.xlu0 %586 }
  0xdc   : > { %v720_v4 = vpop.permute.xlu1 %719  ;;  %v800_v21 = vsel %vm775_vm2, %v394_v31, %v587_v1 }
  0xdd   : > { %v834_v20 = vsel %vm810_vm4, %v799_v2, %v720_v4  ;;  %v349_v2 = vsel %vm333_vm3, %v316_v19, %v332_v22 }
  0xde   : > { %3440 = vmatmul.mubr.msk.f32.gmra.mrb[24].mxu0 %vm848_vm5, %v834_v20 }
  0xdf   : > { %v722_v62 = vpop.permute.xlu0 %721 }
  0xe0   : > { %v589_v40 = vpop.permute.xlu1 %588  ;;  %v835_v63 = vsel %vm810_vm4, %v800_v21, %v722_v62  ;;  %v2346_v21 = vld [vmem:[%s5522_s2] sm:$0xff]  ;;  %v2347_v62 = vld [vmem:[%s5522_s2 + $0x8] sm:$0xff] }
  0xe1   : > { %3442 = vmatprep.mubr.msk.f32.mxu0 %vm848_vm5, %v835_v63  ;;  %v801_v42 = vsel %vm775_vm2, %v345_v15, %v589_v40  ;;  %v3527_v39 = vpack.c.bf16 %v2347_v62, %v2346_v21  ;;  %v4312_v15 = vrot.slane %v3641_v3, 7  ;;  %v4522_v62 = vld [vmem:[%s5523_s3 + $0x1] ss:$0 sm:$0xff] }
  0xe3   : > { %v591_v41 = vpop.permute.xlu0 %590  ;;  %3528 = vmatprep.subr.bf16.mxu1 %v3527_v39 }
  0xe4   : > { %v724_v23 = vpop.permute.xlu1 %723  ;;  %v802_v29 = vsel %vm775_vm2, %v396_v16, %v591_v41  ;;  %3530 = vmatpush3.bf16.msra.mxu1 %v3527_v39  ;;  %v4320_v41 = vsel %vm265_vm6, %v4312_v15, 0.0 }
  0xe5   : > { %v836_v24 = vsel %vm810_vm4, %v801_v42, %v724_v23 }
  0xe6   : > { %3443 = vmatmul.mubr.msk.f32.gmra.mrb[26].mxu0 %vm848_vm5, %v836_v24 }
  0xe7   : > { %v726_v12 = vpop.permute.xlu0 %725 }
  0xe8   : > { %v593_v10 = vpop.permute.xlu1 %592  ;;  %v837_v11 = vsel %vm810_vm4, %v802_v29, %v726_v12 }
  0xe9   : > { %3445 = vmatprep.mubr.msk.f32.mxu0 %vm848_vm5, %v837_v11  ;;  %v803_v18 = vsel %vm775_vm2, %v346_v50, %v593_v10 }
  0xeb   : > { %v595_v9 = vpop.permute.xlu0 %594 }
  0xec   : > { %v728_v38 = vpop.permute.xlu1 %727  ;;  %v804_v48 = vsel %vm775_vm2, %v398_v51, %v595_v9 }
  0xed   : > { %v838_v43 = vsel %vm810_vm4, %v803_v18, %v728_v38 }
  0xee   : > { %3446 = vmatmul.mubr.msk.f32.gmra.mrb[28].mxu0 %vm848_vm5, %v838_v43 }
  0xef   : > { %v730_v49 = vpop.permute.xlu0 %729 }
  0xf0   : > { %v597_v28 = vpop.permute.xlu1 %596  ;;  %v839_v44 = vsel %vm810_vm4, %v804_v48, %v730_v49 }
  0xf1   : > { %3448 = vmatprep.mubr.msk.f32.mxu0 %vm848_vm5, %v839_v44  ;;  %v805_v46 = vsel %vm775_vm2, %v347_v59, %v597_v28 }
  0xf3   : > { %v599_v45 = vpop.permute.xlu0 %598 }
  0xf4   : > { %v732_v47 = vpop.permute.xlu1 %731  ;;  %v806_v53 = vsel %vm775_vm2, %v400_v60, %v599_v45 }
  0xf5   : > { %v840_v52 = vsel %vm810_vm4, %v805_v46, %v732_v47 }
  0xf6   : > { %3449 = vmatmul.mubr.msk.f32.gmra.mrb[30].mxu0 %vm848_vm5, %v840_v52 }
  0xf7   : > { %v734_v54 = vpop.permute.xlu0 %733 }
  0xf8   : > { %v601_v58 = vpop.permute.xlu1 %600  ;;  %v841_v55 = vsel %vm810_vm4, %v806_v53, %v734_v54 }
  0xf9   : > { %3451 = vmatprep.mubr.msk.f32.mxu0 %vm848_vm5, %v841_v55  ;;  %v807_v61 = vsel %vm775_vm2, %v348_v25, %v601_v58 }
  0xfb   : > { %v603_v56 = vpop.permute.xlu0 %602 }
  0xfc   : > { %v736_v30 = vpop.permute.xlu1 %735  ;;  %v808_v0 = vsel %vm775_vm2, %v402_v26, %v603_v56 }
  0xfd   : > { %v842_v31 = vsel %vm810_vm4, %v807_v61, %v736_v30 }
  0xfe   : > { %3452 = vmatmul.mubr.msk.f32.gmra.mrb[32].mxu0 %vm848_vm5, %v842_v31 }
  0xff   : > { %v738_v34 = vpop.permute.xlu0 %737 }
 0x100   : > { %v605_v35 = vpop.permute.xlu1 %604  ;;  %v843_v1 = vsel %vm810_vm4, %v808_v0, %v738_v34 }
 0x101   : > { %3454 = vmatprep.mubr.msk.f32.mxu0 %vm848_vm5, %v843_v1  ;;  %v809_v4 = vsel %vm775_vm2, %v349_v2, %v605_v35  ;;  %v4517_v2 = vld [vmem:[%s5523_s3] ss:$0 sm:$0xff] }
 0x103   : > { %v3567_v63 = vpop.permute.xlu0 %3566 }
 0x104   : > { %v740_v5 = vpop.permute.xlu1 %739  ;;  %v3569_v17 = vunpack.i.h.bf16 %v3567_v63  ;;  %v3568_v8 = vunpack.i.l.bf16 %v3567_v63 }
 0x105   : > { %v844_v20 = vsel %vm810_vm4, %v809_v4, %v740_v5 }
 0x106   : > { %3455 = vmatmul.mubr.msk.f32.gmra.mrb[34].mxu0 %vm848_vm5, %v844_v20  ;;  %v2274_v42 = vsel %vm775_vm2, %v4320_v41, %v3568_v8  ;;  %v2275_v24 = vsel %vm775_vm2, %v4312_v15, %v3569_v17  ;;  %v4528_v17 = vstv %s1624_s18 }
 0x107   : > { %3457 = vmatprep.mubr.msk.f32.mxu0 %vm848_vm5, %v4035_v32 }
 0x10a   : > { %3458 = vmatmul.mubr.msk.f32.gmra.mrb[36].mxu0 %vm848_vm5, %v4038_v33 }
 0x10b   : > { %3460 = vmatprep.mubr.msk.f32.mxu0 %vm848_vm5, %v4035_v32 }
 0x10e   : > { %3461 = vmatmul.mubr.msk.f32.gmra.mrb[38].mxu0 %vm848_vm5, %v4038_v33  ;;  %v2348_v33 = vld [vmem:[%s5522_s2 + $0x10] sm:$0xff] }
 0x10f   : > { %3467 = vmatprep.subr.mxu1 %v2348_v33 }
 0x110   : > { %3468 = vmatpush3.msra.mxu1 %v2348_v33 }
 0x135   : > { %v3572_v40 = vpop.permute.xlu1 %3571 }
 0x136   : > { %v3574_v16 = vunpack.i.h.bf16 %v3572_v40  ;;  %v3573_v32 = vunpack.i.l.bf16 %v3572_v40 }
 0x138   : > { %v2310_v23 = vsel %vm810_vm4, %v2274_v42, %v3573_v32  ;;  %v2311_v29 = vsel %vm810_vm4, %v2275_v24, %v3574_v16 }
 0x139   : > { %3469 = vmatprep.mubr.msk.f32.mxu1 %vm848_vm5, %v2310_v23 }
 0x13a   : > { %3470 = vmatmul.mubr.msk.f32.vlgmr.msra.gmra.mrb[0].mxu1 %vm848_vm5, %v2311_v29 }
 0x155   : > { %v3405_v12 = vpop.f32.mrb[0].mxu0 }
 0x156   : > { %v1017_v13 = vpop.f32.mrb[1].mxu0 }
 0x159   : > { %v4330_v10 = vpop.f32.mrb[2].mxu0 }
 0x15a   : > { %v4332_v11 = vpop.f32.mrb[3].mxu0 }
 0x161   : > { %v4334_v50 = vpop.f32.mrb[4].mxu0 }
 0x162   : > { %1258 = vrot.lane.b32.xlu1 %v4334_v50, %s3644_s16  ;;  %v4338_v51 = vpop.f32.mrb[5].mxu0 }
 0x163   : > { %1256 = vrot.lane.b32.xlu0 %v4338_v51, %s3644_s16 }
 0x169   : > { %v4342_v36 = vpop.f32.mrb[6].mxu0 }
 0x16a   : > { %1404 = vrot.lane.b32.xlu1 %v4342_v36, %s3645_s17  ;;  %v4346_v37 = vpop.f32.mrb[7].mxu0 }
 0x16b   : > { %1402 = vrot.lane.b32.xlu0 %v4346_v37, %s3645_s17 }
 0x16e   : > { %1262 = vrot.lane.b32.xlu1 %v4342_v36, %s3644_s16 }
 0x16f   : > { %1260 = vrot.lane.b32.xlu0 %v4346_v37, %s3644_s16 }
 0x171   : > { %v4354_v9 = vpop.f32.mrb[8].mxu0 }
 0x172   : > { %1408 = vrot.lane.b32.xlu1 %v4354_v9, %s3645_s17  ;;  %v4358_v18 = vpop.f32.mrb[9].mxu0 }
 0x173   : > { %1406 = vrot.lane.b32.xlu0 %v4358_v18, %s3645_s17 }
 0x176   : > { %1266 = vrot.lane.b32.xlu1 %v4354_v9, %s3644_s16 }
 0x177   : > { %1264 = vrot.lane.b32.xlu0 %v4358_v18, %s3644_s16 }
 0x179   : > { %v4366_v38 = vpop.f32.mrb[10].mxu0 }
 0x17a   : > { %1412 = vrot.lane.b32.xlu1 %v4366_v38, %s3645_s17  ;;  %v4370_v43 = vpop.f32.mrb[11].mxu0 }
 0x17b   : > { %1410 = vrot.lane.b32.xlu0 %v4370_v43, %s3645_s17 }
 0x17e   : > { %1270 = vrot.lane.b32.xlu1 %v4366_v38, %s3644_s16 }
 0x17f   : > { %1268 = vrot.lane.b32.xlu0 %v4370_v43, %s3644_s16 }
 0x181   : > { %v4378_v48 = vpop.f32.mrb[12].mxu0 }
 0x182   : > { %1416 = vrot.lane.b32.xlu1 %v4378_v48, %s3645_s17  ;;  %v4382_v49 = vpop.f32.mrb[13].mxu0 }
 0x183   : > { %1414 = vrot.lane.b32.xlu0 %v4382_v49, %s3645_s17 }
 0x186   : > { %1274 = vrot.lane.b32.xlu1 %v4378_v48, %s3644_s16 }
 0x187   : > { %1272 = vrot.lane.b32.xlu0 %v4382_v49, %s3644_s16 }
 0x189   : > { %v4390_v27 = vpop.f32.mrb[14].mxu0 }
 0x18a   : > { %1420 = vrot.lane.b32.xlu1 %v4390_v27, %s3645_s17  ;;  %v4394_v28 = vpop.f32.mrb[15].mxu0 }
 0x18b   : > { %1418 = vrot.lane.b32.xlu0 %v4394_v28, %s3645_s17 }
 0x18e   : > { %1278 = vrot.lane.b32.xlu1 %v4390_v27, %s3644_s16 }
 0x18f   : > { %1276 = vrot.lane.b32.xlu0 %v4394_v28, %s3644_s16 }
 0x191   : > { %v4402_v44 = vpop.f32.mrb[16].mxu0 }
 0x192   : > { %1424 = vrot.lane.b32.xlu1 %v4402_v44, %s3645_s17  ;;  %v4406_v59 = vpop.f32.mrb[17].mxu0 }
 0x193   : > { %1422 = vrot.lane.b32.xlu0 %v4406_v59, %s3645_s17 }
 0x196   : > { %1282 = vrot.lane.b32.xlu1 %v4402_v44, %s3644_s16 }
 0x197   : > { %1280 = vrot.lane.b32.xlu0 %v4406_v59, %s3644_s16 }
 0x199   : > { %v4414_v60 = vpop.f32.mrb[18].mxu0 }
 0x19a   : > { %1428 = vrot.lane.b32.xlu1 %v4414_v60, %s3645_s17  ;;  %v4418_v19 = vpop.f32.mrb[19].mxu0 }
 0x19b   : > { %1426 = vrot.lane.b32.xlu0 %v4418_v19, %s3645_s17 }
 0x19e   : > { %1286 = vrot.lane.b32.xlu1 %v4414_v60, %s3644_s16 }
 0x19f   : > { %1284 = vrot.lane.b32.xlu0 %v4418_v19, %s3644_s16 }
 0x1a1   : > { %v4426_v22 = vpop.f32.mrb[20].mxu0 }
 0x1a2   : > { %1432 = vrot.lane.b32.xlu1 %v4426_v22, %s3645_s17  ;;  %v4430_v45 = vpop.f32.mrb[21].mxu0 }
 0x1a3   : > { %1430 = vrot.lane.b32.xlu0 %v4430_v45, %s3645_s17 }
 0x1a6   : > { %1290 = vrot.lane.b32.xlu1 %v4426_v22, %s3644_s16 }
 0x1a7   : > { %1288 = vrot.lane.b32.xlu0 %v4430_v45, %s3644_s16 }
 0x1a9   : > { %v4438_v46 = vpop.f32.mrb[22].mxu0 }
 0x1aa   : > { %1436 = vrot.lane.b32.xlu1 %v4438_v46, %s3645_s17  ;;  %v4442_v47 = vpop.f32.mrb[23].mxu0 }
 0x1ab   : > { %1434 = vrot.lane.b32.xlu0 %v4442_v47, %s3645_s17 }
 0x1ae   : > { %1294 = vrot.lane.b32.xlu1 %v4438_v46, %s3644_s16 }
 0x1af   : > { %1292 = vrot.lane.b32.xlu0 %v4442_v47, %s3644_s16 }
 0x1b1   : > { %v4450_v52 = vpop.f32.mrb[24].mxu0 }
 0x1b2   : > { %1440 = vrot.lane.b32.xlu1 %v4450_v52, %s3645_s17  ;;  %v4454_v53 = vpop.f32.mrb[25].mxu0 }
 0x1b3   : > { %1438 = vrot.lane.b32.xlu0 %v4454_v53, %s3645_s17 }
 0x1b6   : > { %1298 = vrot.lane.b32.xlu1 %v4450_v52, %s3644_s16 }
 0x1b7   : > { %1296 = vrot.lane.b32.xlu0 %v4454_v53, %s3644_s16 }
 0x1b9   : > { %v4462_v54 = vpop.f32.mrb[26].mxu0 }
 0x1ba   : > { %1444 = vrot.lane.b32.xlu1 %v4462_v54, %s3645_s17  ;;  %v4466_v57 = vpop.f32.mrb[27].mxu0 }
 0x1bb   : > { %1442 = vrot.lane.b32.xlu0 %v4466_v57, %s3645_s17 }
 0x1be   : > { %1302 = vrot.lane.b32.xlu1 %v4462_v54, %s3644_s16 }
 0x1bf   : > { %1300 = vrot.lane.b32.xlu0 %v4466_v57, %s3644_s16 }
 0x1c1   : > { %v4474_v58 = vpop.f32.mrb[28].mxu0 }
 0x1c2   : > { %1448 = vrot.lane.b32.xlu1 %v4474_v58, %s3645_s17  ;;  %v4478_v55 = vpop.f32.mrb[29].mxu0 }
 0x1c3   : > { %1446 = vrot.lane.b32.xlu0 %v4478_v55, %s3645_s17 }
 0x1c6   : > { %1306 = vrot.lane.b32.xlu1 %v4474_v58, %s3644_s16 }
 0x1c7   : > { %1304 = vrot.lane.b32.xlu0 %v4478_v55, %s3644_s16 }
 0x1c9   : > { %v4486_v25 = vpop.f32.mrb[30].mxu0 }
 0x1ca   : > { %1452 = vrot.lane.b32.xlu1 %v4486_v25, %s3645_s17  ;;  %v4490_v26 = vpop.f32.mrb[31].mxu0 }
 0x1cb   : > { %1450 = vrot.lane.b32.xlu0 %v4490_v26, %s3645_s17 }
 0x1ce   : > { %1310 = vrot.lane.b32.xlu1 %v4486_v25, %s3644_s16 }
 0x1cf   : > { %1308 = vrot.lane.b32.xlu0 %v4490_v26, %s3644_s16 }
 0x1d1   : > { %v4498_v56 = vpop.f32.mrb[32].mxu0 }
 0x1d2   : > { %1456 = vrot.lane.b32.xlu1 %v4498_v56, %s3645_s17  ;;  %v4502_v61 = vpop.f32.mrb[33].mxu0 }
 0x1d3   : > { %1454 = vrot.lane.b32.xlu0 %v4502_v61, %s3645_s17 }
 0x1d4   : > { %v1259_v30 = vpop.permute.xlu1 %1258 }
 0x1d5   : > { %v1257_v31 = vpop.permute.xlu0 %1256  ;;  %v1363_v35 = vadd.f32 %v4330_v10, %v1259_v30 }
 0x1d6   : > { %1314 = vrot.lane.b32.xlu1 %v4498_v56, %s3644_s16  ;;  %v1362_v1 = vadd.f32 %v1257_v31, %v4332_v11 }
 0x1d7   : > { %1312 = vrot.lane.b32.xlu0 %v4502_v61, %s3644_s16 }
 0x1d9   : > { %v3456_v0 = vpop.f32.mrb[34].mxu0 }
 0x1da   : > { %1460 = vrot.lane.b32.xlu1 %v3456_v0, %s3645_s17  ;;  %v1187_v34 = vpop.f32.mrb[35].mxu0 }
 0x1db   : > { %1458 = vrot.lane.b32.xlu0 %v1187_v34, %s3645_s17 }
 0x1dc   : > { %v1405_v4 = vpop.permute.xlu1 %1404 }
 0x1dd   : > { %v1509_v5 = vadd.f32 %v1405_v4, %v1363_v35  ;;  %v1403_v20 = vpop.permute.xlu0 %1402  ;;  %v3459_v21 = vpop.f32.mrb[36].mxu0 }
 0x1de   : > { %v1508_v39 = vadd.f32 %v1403_v20, %v1362_v1  ;;  %1318 = vrot.lane.b32.xlu1 %v3456_v0, %s3644_s16  ;;  %v1197_v40 = vpop.f32.mrb[37].mxu0 }
 0x1df   : > { %v1550_v63 = vmul.f32 %v4517_v2, %v1509_v5  ;;  %1316 = vrot.lane.b32.xlu0 %v1187_v34, %s3644_s16 }
 0x1e0   : > { %v1549_v16 = vmul.f32 %v4517_v2, %v1508_v39  ;;  %v1263_v32 = vpop.permute.xlu1 %1262 }
 0x1e1   : > { %v1591_v8 = vadd.f32 %v4522_v62, %v1550_v63  ;;  %v1261_v33 = vpop.permute.xlu0 %1260  ;;  %v3462_v42 = vpop.f32.mrb[38].mxu0  ;;  %v1365_v29 = vadd.f32 %v4334_v50, %v1263_v32 }
 0x1e2   : > { %v1590_v23 = vadd.f32 %v4522_v62, %v1549_v16  ;;  %1464 = vrot.lane.b32.xlu1 %v3459_v21, %s3645_s17  ;;  %v1207_v24 = vpop.f32.mrb[39].mxu0  ;;  %v1364_v13 = vadd.f32 %v1261_v33, %v4338_v51 }
 0x1e3   : > { %1462 = vrot.lane.b32.xlu0 %v1197_v40, %s3645_s17  ;;  %vm1628_vm7 = vcmp.ge.f32.partialorder %v1591_v8, 0.0  ;;  %v1665_v12 = vmul.f32 %v4528_v17, %v1591_v8 }
 0x1e4   : > { %v1409_v10 = vpop.permute.xlu1 %1408  ;;  %vm1627_vm8 = vcmp.ge.f32.partialorder %v1590_v23, 0.0  ;;  %v1664_v11 = vmul.f32 %v4528_v17, %v1590_v23 }
 0x1e5   : > { %v1511_v30 = vadd.f32 %v1409_v10, %v1365_v29  ;;  %v1407_v31 = vpop.permute.xlu0 %1406  ;;  %v1701_v0 = vsel %vm1628_vm7, %v1591_v8, %v1665_v12 }
 0x1e6   : > { %v1510_v34 = vadd.f32 %v1407_v31, %v1364_v13  ;;  %v1789_v35 = vrot.slane %v1701_v0, 7  ;;  %v1897_v1 = vrot.slane %v1701_v0, 1  ;;  %2028 = vrot.lane.b32.xlu1 %v1701_v0, %s3642_s27  ;;  %v1700_v50 = vsel %vm1627_vm8, %v1590_v23, %v1664_v11 }
 0x1e7   : > { %v1552_v4 = vmul.f32 %v4517_v2, %v1511_v30  ;;  %v1771_v5 = vrot.slane %v1700_v50, 7  ;;  %v1879_v20 = vrot.slane %v1700_v50, 1  ;;  %2026 = vrot.lane.b32.xlu0 %v1700_v50, %s3642_s27 }
 0x1e8   : > { %v1551_v51 = vmul.f32 %v4517_v2, %v1510_v34  ;;  %v1267_v21 = vpop.permute.xlu1 %1266 }
 0x1e9   : > { %v1593_v39 = vadd.f32 %v4522_v62, %v1552_v4  ;;  %v1265_v40 = vpop.permute.xlu0 %1264  ;;  %v1915_v63 = vsel %vm436_vm0, %v1879_v20, %v1897_v1  ;;  %v1933_v16 = vsel %vm436_vm0, %v1897_v1, %v1879_v20  ;;  %v4550_v8 = vsel %vm333_vm3, %v1771_v5, %v1789_v35 }
 0x1ea   : > { %v1592_v32 = vadd.f32 %v4522_v62, %v1551_v51  ;;  %v1367_v33 = vadd.f32 %v4342_v36, %v1267_v21  ;;  %v4557_v23 = vsel %vm333_vm3, %v1789_v35, %v1771_v5  ;;  %v1366_v24 = vadd.f32 %v1265_v40, %v4346_v37 }
 0x1eb   : > { %2170 = vrot.lane.b32.xlu0 %v1915_v63, %s3643_s30  ;;  %vm1630_vm9 = vcmp.ge.f32.partialorder %v1593_v39, 0.0  ;;  %v1667_v42 = vmul.f32 %v4528_v17, %v1593_v39  ;;  %v1953_v20 = vsel %vm268_vm1, %v1933_v16, 0.0 }
 0x1ec   : > { %v1413_v29 = vpop.permute.xlu1 %1412  ;;  %vm1629_vm10 = vcmp.ge.f32.partialorder %v1592_v32, 0.0  ;;  %v1666_v12 = vmul.f32 %v4528_v17, %v1592_v32 }
 0x1ed   : > { %v1513_v13 = vadd.f32 %v1413_v29, %v1367_v33  ;;  %v1411_v10 = vpop.permute.xlu0 %1410  ;;  %v1703_v11 = vsel %vm1630_vm9, %v1593_v39, %v1667_v42 }
 0x1ee   : > { %v1512_v30 = vadd.f32 %v1411_v10, %v1366_v24  ;;  %v1790_v36 = vrot.slane %v1703_v11, 7  ;;  %v1898_v31 = vrot.slane %v1703_v11, 1  ;;  %2032 = vrot.lane.b32.xlu1 %v1703_v11, %s3642_s27  ;;  %v1702_v0 = vsel %vm1629_vm10, %v1592_v32, %v1666_v12 }
 0x1ef   : > { %v1554_v34 = vmul.f32 %v4517_v2, %v1513_v13  ;;  %v1772_v1 = vrot.slane %v1702_v0, 7  ;;  %v1880_v35 = vrot.slane %v1702_v0, 1  ;;  %2030 = vrot.lane.b32.xlu0 %v1702_v0, %s3642_s27 }
 0x1f0   : > { %v1553_v37 = vmul.f32 %v4517_v2, %v1512_v30  ;;  %v1271_v50 = vpop.permute.xlu1 %1270 }
 0x1f1   : > { %v1595_v4 = vadd.f32 %v4522_v62, %v1554_v34  ;;  %v1269_v5 = vpop.permute.xlu0 %1268  ;;  %v1916_v51 = vsel %vm436_vm0, %v1880_v35, %v1898_v31  ;;  %v1934_v21 = vsel %vm436_vm0, %v1898_v31, %v1880_v35  ;;  %v4576_v40 = vsel %vm333_vm3, %v1772_v1, %v1790_v36 }
 0x1f2   : > { %v1594_v39 = vadd.f32 %v4522_v62, %v1553_v37  ;;  %2172 = vrot.lane.b32.xlu1 %v1953_v20, %s3643_s30  ;;  %v1369_v63 = vadd.f32 %v4354_v9, %v1271_v50  ;;  %v4583_v32 = vsel %vm333_vm3, %v1790_v36, %v1772_v1  ;;  %v1368_v33 = vadd.f32 %v1269_v5, %v4358_v18 }
 0x1f3   : > { %2174 = vrot.lane.b32.xlu0 %v1916_v51, %s3643_s30  ;;  %vm1632_vm11 = vcmp.ge.f32.partialorder %v1595_v4, 0.0  ;;  %v1669_v16 = vmul.f32 %v4528_v17, %v1595_v4  ;;  %v1955_v37 = vsel %vm268_vm1, %v1934_v21, 0.0 }
 0x1f4   : > { %v1417_v42 = vpop.permute.xlu1 %1416  ;;  %vm1631_vm12 = vcmp.ge.f32.partialorder %v1594_v39, 0.0  ;;  %v1668_v24 = vmul.f32 %v4528_v17, %v1594_v39 }
 0x1f5   : > { %v1515_v29 = vadd.f32 %v1417_v42, %v1369_v63  ;;  %v1415_v12 = vpop.permute.xlu0 %1414  ;;  %v1705_v13 = vsel %vm1632_vm11, %v1595_v4, %v1669_v16 }
 0x1f6   : > { %v1514_v10 = vadd.f32 %v1415_v12, %v1368_v33  ;;  %v1791_v9 = vrot.slane %v1705_v13, 7  ;;  %v1899_v11 = vrot.slane %v1705_v13, 1  ;;  %2036 = vrot.lane.b32.xlu1 %v1705_v13, %s3642_s27  ;;  %v1704_v30 = vsel %vm1631_vm12, %v1594_v39, %v1668_v24 }
 0x1f7   : > { %v1556_v31 = vmul.f32 %v4517_v2, %v1515_v29  ;;  %v1773_v0 = vrot.slane %v1704_v30, 7  ;;  %v1881_v36 = vrot.slane %v1704_v30, 1  ;;  %2034 = vrot.lane.b32.xlu0 %v1704_v30, %s3642_s27 }
 0x1f8   : > { %v1555_v18 = vmul.f32 %v4517_v2, %v1514_v10  ;;  %v1275_v34 = vpop.permute.xlu1 %1274 }
 0x1f9   : > { %v1597_v1 = vadd.f32 %v4522_v62, %v1556_v31  ;;  %v1273_v35 = vpop.permute.xlu0 %1272  ;;  %v1917_v50 = vsel %vm436_vm0, %v1881_v36, %v1899_v11  ;;  %v1935_v4 = vsel %vm436_vm0, %v1899_v11, %v1881_v36  ;;  %v4602_v20 = vsel %vm333_vm3, %v1773_v0, %v1791_v9 }
 0x1fa   : > { %v1596_v5 = vadd.f32 %v4522_v62, %v1555_v18  ;;  %2176 = vrot.lane.b32.xlu1 %v1955_v37, %s3643_s30  ;;  %v1371_v51 = vadd.f32 %v4366_v38, %v1275_v34  ;;  %v4609_v39 = vsel %vm333_vm3, %v1791_v9, %v1773_v0  ;;  %v1370_v63 = vadd.f32 %v1273_v35, %v4370_v43 }
 0x1fb   : > { %2178 = vrot.lane.b32.xlu0 %v1917_v50, %s3643_s30  ;;  %vm1634_vm13 = vcmp.ge.f32.partialorder %v1597_v1, 0.0  ;;  %v1671_v21 = vmul.f32 %v4528_v17, %v1597_v1  ;;  %v1957_v18 = vsel %vm268_vm1, %v1935_v4, 0.0 }
 0x1fc   : > { %v1421_v16 = vpop.permute.xlu1 %1420  ;;  %vm1633_vm14 = vcmp.ge.f32.partialorder %v1596_v5, 0.0  ;;  %v1670_v33 = vmul.f32 %v4528_v17, %v1596_v5 }
 0x1fd   : > { %v1517_v42 = vadd.f32 %v1421_v16, %v1371_v51  ;;  %v1419_v24 = vpop.permute.xlu0 %1418  ;;  %v1707_v29 = vsel %vm1634_vm13, %v1597_v1, %v1671_v21 }
 0x1fe   : > { %v1516_v12 = vadd.f32 %v1419_v24, %v1370_v63  ;;  %v1792_v38 = vrot.slane %v1707_v29, 7  ;;  %v1900_v13 = vrot.slane %v1707_v29, 1  ;;  %2040 = vrot.lane.b32.xlu1 %v1707_v29, %s3642_s27  ;;  %v1706_v10 = vsel %vm1633_vm14, %v1596_v5, %v1670_v33 }
 0x1ff   : > { %v1558_v11 = vmul.f32 %v4517_v2, %v1517_v42  ;;  %v1774_v30 = vrot.slane %v1706_v10, 7  ;;  %v1882_v9 = vrot.slane %v1706_v10, 1  ;;  %2038 = vrot.lane.b32.xlu0 %v1706_v10, %s3642_s27 }
 0x200   : > { %v1557_v43 = vmul.f32 %v4517_v2, %v1516_v12  ;;  %v1279_v31 = vpop.permute.xlu1 %1278 }
 0x201   : > { %v1599_v0 = vadd.f32 %v4522_v62, %v1558_v11  ;;  %v1277_v36 = vpop.permute.xlu0 %1276  ;;  %v1918_v34 = vsel %vm436_vm0, %v1882_v9, %v1900_v13  ;;  %v1936_v1 = vsel %vm436_vm0, %v1900_v13, %v1882_v9  ;;  %v4628_v37 = vsel %vm333_vm3, %v1774_v30, %v1792_v38 }
 0x202   : > { %v1598_v35 = vadd.f32 %v4522_v62, %v1557_v43  ;;  %2180 = vrot.lane.b32.xlu1 %v1957_v18, %s3643_s30  ;;  %v1373_v50 = vadd.f32 %v4378_v48, %v1279_v31  ;;  %v4635_v5 = vsel %vm333_vm3, %v1792_v38, %v1774_v30  ;;  %v1372_v51 = vadd.f32 %v1277_v36, %v4382_v49 }
 0x203   : > { %2182 = vrot.lane.b32.xlu0 %v1918_v34, %s3643_s30  ;;  %vm1636_vm15 = vcmp.ge.f32.partialorder %v1599_v0, 0.0  ;;  %v1673_v4 = vmul.f32 %v4528_v17, %v1599_v0  ;;  %v1959_v43 = vsel %vm268_vm1, %v1936_v1, 0.0 }
 0x204   : > { %v1425_v21 = vpop.permute.xlu1 %1424  ;;  %vm1635_vm7 = vcmp.ge.f32.partialorder %v1598_v35, 0.0  ;;  %v1672_v63 = vmul.f32 %v4528_v17, %v1598_v35 }
 0x205   : > { %v1519_v16 = vadd.f32 %v1425_v21, %v1373_v50  ;;  %v1423_v33 = vpop.permute.xlu0 %1422  ;;  %v1709_v42 = vsel %vm1636_vm15, %v1599_v0, %v1673_v4 }
 0x206   : > { %v1518_v24 = vadd.f32 %v1423_v33, %v1372_v51  ;;  %v1793_v48 = vrot.slane %v1709_v42, 7  ;;  %v1901_v29 = vrot.slane %v1709_v42, 1  ;;  %2044 = vrot.lane.b32.xlu1 %v1709_v42, %s3642_s27  ;;  %v1708_v12 = vsel %vm1635_vm7, %v1598_v35, %v1672_v63 }
 0x207   : > { %v1560_v13 = vmul.f32 %v4517_v2, %v1519_v16  ;;  %v1775_v10 = vrot.slane %v1708_v12, 7  ;;  %v1883_v38 = vrot.slane %v1708_v12, 1  ;;  %2042 = vrot.lane.b32.xlu0 %v1708_v12, %s3642_s27 }
 0x208   : > { %v1559_v49 = vmul.f32 %v4517_v2, %v1518_v24  ;;  %v1283_v11 = vpop.permute.xlu1 %1282 }
 0x209   : > { %v1601_v30 = vadd.f32 %v4522_v62, %v1560_v13  ;;  %v1281_v9 = vpop.permute.xlu0 %1280  ;;  %v1919_v31 = vsel %vm436_vm0, %v1883_v38, %v1901_v29  ;;  %v1937_v0 = vsel %vm436_vm0, %v1901_v29, %v1883_v38  ;;  %v4654_v18 = vsel %vm333_vm3, %v1775_v10, %v1793_v48 }
 0x20a   : > { %v1600_v36 = vadd.f32 %v4522_v62, %v1559_v49  ;;  %2184 = vrot.lane.b32.xlu1 %v1959_v43, %s3643_s30  ;;  %v1375_v34 = vadd.f32 %v4390_v27, %v1283_v11  ;;  %v4661_v35 = vsel %vm333_vm3, %v1793_v48, %v1775_v10  ;;  %v1374_v50 = vadd.f32 %v1281_v9, %v4394_v28 }
 0x20b   : > { %2186 = vrot.lane.b32.xlu0 %v1919_v31, %s3643_s30  ;;  %vm1638_vm8 = vcmp.ge.f32.partialorder %v1601_v30, 0.0  ;;  %v1675_v1 = vmul.f32 %v4528_v17, %v1601_v30  ;;  %v1961_v49 = vsel %vm268_vm1, %v1937_v0, 0.0 }
 0x20c   : > { %v1429_v4 = vpop.permute.xlu1 %1428  ;;  %vm1637_vm9 = vcmp.ge.f32.partialorder %v1600_v36, 0.0  ;;  %v1674_v51 = vmul.f32 %v4528_v17, %v1600_v36 }
 0x20d   : > { %v1521_v21 = vadd.f32 %v1429_v4, %v1375_v34  ;;  %v1427_v63 = vpop.permute.xlu0 %1426  ;;  %v1711_v16 = vsel %vm1638_vm8, %v1601_v30, %v1675_v1 }
 0x20e   : > { %v1520_v33 = vadd.f32 %v1427_v63, %v1374_v50  ;;  %v1794_v27 = vrot.slane %v1711_v16, 7  ;;  %v1902_v42 = vrot.slane %v1711_v16, 1  ;;  %2048 = vrot.lane.b32.xlu1 %v1711_v16, %s3642_s27  ;;  %v1710_v24 = vsel %vm1637_vm9, %v1600_v36, %v1674_v51 }
 0x20f   : > { %v1562_v29 = vmul.f32 %v4517_v2, %v1521_v21  ;;  %v1776_v12 = vrot.slane %v1710_v24, 7  ;;  %v1884_v48 = vrot.slane %v1710_v24, 1  ;;  %2046 = vrot.lane.b32.xlu0 %v1710_v24, %s3642_s27 }
 0x210   : > { %v1561_v28 = vmul.f32 %v4517_v2, %v1520_v33  ;;  %v1287_v13 = vpop.permute.xlu1 %1286 }
 0x211   : > { %v1603_v10 = vadd.f32 %v4522_v62, %v1562_v29  ;;  %v1285_v38 = vpop.permute.xlu0 %1284  ;;  %v1920_v11 = vsel %vm436_vm0, %v1884_v48, %v1902_v42  ;;  %v1938_v30 = vsel %vm436_vm0, %v1902_v42, %v1884_v48  ;;  %v4680_v43 = vsel %vm333_vm3, %v1776_v12, %v1794_v27 }
 0x212   : > { %v1602_v9 = vadd.f32 %v4522_v62, %v1561_v28  ;;  %2188 = vrot.lane.b32.xlu1 %v1961_v49, %s3643_s30  ;;  %v1377_v31 = vadd.f32 %v4402_v44, %v1287_v13  ;;  %v4687_v36 = vsel %vm333_vm3, %v1794_v27, %v1776_v12  ;;  %v1376_v34 = vadd.f32 %v1285_v38, %v4406_v59 }
 0x213   : > { %2190 = vrot.lane.b32.xlu0 %v1920_v11, %s3643_s30  ;;  %vm1640_vm10 = vcmp.ge.f32.partialorder %v1603_v10, 0.0  ;;  %v1677_v0 = vmul.f32 %v4528_v17, %v1603_v10  ;;  %v1963_v28 = vsel %vm268_vm1, %v1938_v30, 0.0 }
 0x214   : > { %v1433_v1 = vpop.permute.xlu1 %1432  ;;  %vm1639_vm11 = vcmp.ge.f32.partialorder %v1602_v9, 0.0  ;;  %v1676_v50 = vmul.f32 %v4528_v17, %v1602_v9 }
 0x215   : > { %v1523_v4 = vadd.f32 %v1433_v1, %v1377_v31  ;;  %v1431_v51 = vpop.permute.xlu0 %1430  ;;  %v1713_v21 = vsel %vm1640_vm10, %v1603_v10, %v1677_v0 }
 0x216   : > { %v1522_v63 = vadd.f32 %v1431_v51, %v1376_v34  ;;  %v1795_v44 = vrot.slane %v1713_v21, 7  ;;  %v1903_v16 = vrot.slane %v1713_v21, 1  ;;  %2052 = vrot.lane.b32.xlu1 %v1713_v21, %s3642_s27  ;;  %v1712_v33 = vsel %vm1639_vm11, %v1602_v9, %v1676_v50 }
 0x217   : > { %v1564_v42 = vmul.f32 %v4517_v2, %v1523_v4  ;;  %v1777_v24 = vrot.slane %v1712_v33, 7  ;;  %v1885_v27 = vrot.slane %v1712_v33, 1  ;;  %2050 = vrot.lane.b32.xlu0 %v1712_v33, %s3642_s27 }
 0x218   : > { %v1563_v59 = vmul.f32 %v4517_v2, %v1522_v63  ;;  %v1291_v29 = vpop.permute.xlu1 %1290 }
 0x219   : > { %v1605_v12 = vadd.f32 %v4522_v62, %v1564_v42  ;;  %v1289_v48 = vpop.permute.xlu0 %1288  ;;  %v1921_v13 = vsel %vm436_vm0, %v1885_v27, %v1903_v16  ;;  %v1939_v10 = vsel %vm436_vm0, %v1903_v16, %v1885_v27  ;;  %v4706_v49 = vsel %vm333_vm3, %v1777_v24, %v1795_v44 }
 0x21a   : > { %v1604_v38 = vadd.f32 %v4522_v62, %v1563_v59  ;;  %2192 = vrot.lane.b32.xlu1 %v1963_v28, %s3643_s30  ;;  %v1379_v11 = vadd.f32 %v4414_v60, %v1291_v29  ;;  %v4713_v9 = vsel %vm333_vm3, %v1795_v44, %v1777_v24  ;;  %v1378_v31 = vadd.f32 %v1289_v48, %v4418_v19 }
 0x21b   : > { %2194 = vrot.lane.b32.xlu0 %v1921_v13, %s3643_s30  ;;  %vm1642_vm12 = vcmp.ge.f32.partialorder %v1605_v12, 0.0  ;;  %v1679_v30 = vmul.f32 %v4528_v17, %v1605_v12  ;;  %v1965_v59 = vsel %vm268_vm1, %v1939_v10, 0.0 }
 0x21c   : > { %v1437_v0 = vpop.permute.xlu1 %1436  ;;  %vm1641_vm13 = vcmp.ge.f32.partialorder %v1604_v38, 0.0  ;;  %v1678_v34 = vmul.f32 %v4528_v17, %v1604_v38 }
 0x21d   : > { %v1525_v1 = vadd.f32 %v1437_v0, %v1379_v11  ;;  %v1435_v50 = vpop.permute.xlu0 %1434  ;;  %v1715_v4 = vsel %vm1642_vm12, %v1605_v12, %v1679_v30 }
 0x21e   : > { %v1524_v51 = vadd.f32 %v1435_v50, %v1378_v31  ;;  %v1796_v60 = vrot.slane %v1715_v4, 7  ;;  %v1904_v21 = vrot.slane %v1715_v4, 1  ;;  %2056 = vrot.lane.b32.xlu1 %v1715_v4, %s3642_s27  ;;  %v1714_v63 = vsel %vm1641_vm13, %v1604_v38, %v1678_v34 }
 0x21f   : > { %v1566_v16 = vmul.f32 %v4517_v2, %v1525_v1  ;;  %v1778_v33 = vrot.slane %v1714_v63, 7  ;;  %v1886_v44 = vrot.slane %v1714_v63, 1  ;;  %2054 = vrot.lane.b32.xlu0 %v1714_v63, %s3642_s27 }
 0x220   : > { %v1565_v19 = vmul.f32 %v4517_v2, %v1524_v51  ;;  %v1295_v42 = vpop.permute.xlu1 %1294 }
 0x221   : > { %v1607_v24 = vadd.f32 %v4522_v62, %v1566_v16  ;;  %v1293_v27 = vpop.permute.xlu0 %1292  ;;  %v1922_v29 = vsel %vm436_vm0, %v1886_v44, %v1904_v21  ;;  %v1940_v12 = vsel %vm436_vm0, %v1904_v21, %v1886_v44  ;;  %v4732_v28 = vsel %vm333_vm3, %v1778_v33, %v1796_v60 }
 0x222   : > { %v1606_v48 = vadd.f32 %v4522_v62, %v1565_v19  ;;  %2196 = vrot.lane.b32.xlu1 %v1965_v59, %s3643_s30  ;;  %v1381_v13 = vadd.f32 %v4426_v22, %v1295_v42  ;;  %v4739_v38 = vsel %vm333_vm3, %v1796_v60, %v1778_v33  ;;  %v1380_v11 = vadd.f32 %v1293_v27, %v4430_v45 }
 0x223   : > { %2198 = vrot.lane.b32.xlu0 %v1922_v29, %s3643_s30  ;;  %vm1644_vm14 = vcmp.ge.f32.partialorder %v1607_v24, 0.0  ;;  %v1681_v10 = vmul.f32 %v4528_v17, %v1607_v24  ;;  %v1967_v19 = vsel %vm268_vm1, %v1940_v12, 0.0  ;;  %v4760_v29 = vpop.f32.mrb[0].mxu1 }
 0x224   : > { %v1441_v30 = vpop.permute.xlu1 %1440  ;;  %vm1643_vm15 = vcmp.ge.f32.partialorder %v1606_v48, 0.0  ;;  %v1680_v31 = vmul.f32 %v4528_v17, %v1606_v48 }
 0x225   : > { %v1527_v0 = vadd.f32 %v1441_v30, %v1381_v13  ;;  %v1439_v34 = vpop.permute.xlu0 %1438  ;;  %v1717_v1 = vsel %vm1644_vm14, %v1607_v24, %v1681_v10  ;;  %v4769_v10 = vpop.f32.mrb[1].mxu1 }
 0x226   : > { %v1526_v50 = vadd.f32 %v1439_v34, %v1380_v11  ;;  %v1797_v22 = vrot.slane %v1717_v1, 7  ;;  %v1905_v4 = vrot.slane %v1717_v1, 1  ;;  %2060 = vrot.lane.b32.xlu1 %v1717_v1, %s3642_s27  ;;  %v1716_v51 = vsel %vm1643_vm15, %v1606_v48, %v1680_v31 }
 0x227   : > { %v1568_v21 = vmul.f32 %v4517_v2, %v1527_v0  ;;  %v1779_v63 = vrot.slane %v1716_v51, 7  ;;  %v1887_v60 = vrot.slane %v1716_v51, 1  ;;  %2058 = vrot.lane.b32.xlu0 %v1716_v51, %s3642_s27 }
 0x228   : > { %v1567_v45 = vmul.f32 %v4517_v2, %v1526_v50  ;;  %v1299_v16 = vpop.permute.xlu1 %1298 }
 0x229   : > { %v1609_v33 = vadd.f32 %v4522_v62, %v1568_v21  ;;  %v1297_v44 = vpop.permute.xlu0 %1296  ;;  %v1923_v42 = vsel %vm436_vm0, %v1887_v60, %v1905_v4  ;;  %v1941_v24 = vsel %vm436_vm0, %v1905_v4, %v1887_v60  ;;  %v4758_v59 = vsel %vm333_vm3, %v1779_v63, %v1797_v22 }
 0x22a   : > { %v1608_v27 = vadd.f32 %v4522_v62, %v1567_v45  ;;  %2200 = vrot.lane.b32.xlu1 %v1967_v19, %s3643_s30  ;;  %v1383_v48 = vadd.f32 %v4438_v46, %v1299_v16  ;;  %v4767_v13 = vsel %vm333_vm3, %v1797_v22, %v1779_v63  ;;  %v1382_v11 = vadd.f32 %v1297_v44, %v4442_v47 }
 0x22b   : > { %2202 = vrot.lane.b32.xlu0 %v1923_v42, %s3643_s30  ;;  %vm1646_vm7 = vcmp.ge.f32.partialorder %v1609_v33, 0.0  ;;  %v1683_v12 = vmul.f32 %v4528_v17, %v1609_v33 }
 0x22c   : > { %v1445_v30 = vpop.permute.xlu1 %1444  ;;  %vm1645_vm8 = vcmp.ge.f32.partialorder %v1608_v27, 0.0  ;;  %v1682_v31 = vmul.f32 %v4528_v17, %v1608_v27 }
 0x22d   : > { %v1529_v0 = vadd.f32 %v1445_v30, %v1383_v48  ;;  %v1443_v34 = vpop.permute.xlu0 %1442  ;;  %v1719_v46 = vsel %vm1646_vm7, %v1609_v33, %v1683_v12  ;;  %v1969_v33 = vsel %vm268_vm1, %v1941_v24, 0.0 }
 0x22e   : > { %v1528_v1 = vadd.f32 %v1443_v34, %v1382_v11  ;;  %v1798_v50 = vrot.slane %v1719_v46, 7  ;;  %v1906_v4 = vrot.slane %v1719_v46, 1  ;;  %2064 = vrot.lane.b32.xlu1 %v1719_v46, %s3642_s27  ;;  %v1718_v51 = vsel %vm1645_vm8, %v1608_v27, %v1682_v31 }
 0x22f   : > { %v1570_v22 = vmul.f32 %v4517_v2, %v1529_v0  ;;  %v1780_v21 = vrot.slane %v1718_v51, 7  ;;  %v1888_v63 = vrot.slane %v1718_v51, 1  ;;  %2062 = vrot.lane.b32.xlu0 %v1718_v51, %s3642_s27 }
 0x230   : > { %v1569_v47 = vmul.f32 %v4517_v2, %v1528_v1  ;;  %v1303_v60 = vpop.permute.xlu1 %1302 }
 0x231   : > { %v1611_v45 = vadd.f32 %v4522_v62, %v1570_v22  ;;  %v1301_v16 = vpop.permute.xlu0 %1300  ;;  %v1924_v44 = vsel %vm436_vm0, %v1888_v63, %v1906_v4  ;;  %v1942_v19 = vsel %vm436_vm0, %v1906_v4, %v1888_v63  ;;  %v4788_v27 = vsel %vm333_vm3, %v1780_v21, %v1798_v50 }
 0x232   : > { %v1610_v42 = vadd.f32 %v4522_v62, %v1569_v47  ;;  %2204 = vrot.lane.b32.xlu1 %v1969_v33, %s3643_s30  ;;  %v1385_v48 = vadd.f32 %v4450_v52, %v1303_v60  ;;  %v4795_v12 = vsel %vm333_vm3, %v1798_v50, %v1780_v21  ;;  %v1384_v11 = vadd.f32 %v1301_v16, %v4454_v53 }
 0x233   : > { %2206 = vrot.lane.b32.xlu0 %v1924_v44, %s3643_s30  ;;  %vm1648_vm9 = vcmp.ge.f32.partialorder %v1611_v45, 0.0  ;;  %v1685_v24 = vmul.f32 %v4528_v17, %v1611_v45 }
 0x234   : > { %v1449_v30 = vpop.permute.xlu1 %1448  ;;  %vm1647_vm10 = vcmp.ge.f32.partialorder %v1610_v42, 0.0  ;;  %v1684_v31 = vmul.f32 %v4528_v17, %v1610_v42 }
 0x235   : > { %v1531_v0 = vadd.f32 %v1449_v30, %v1385_v48  ;;  %v1447_v34 = vpop.permute.xlu0 %1446  ;;  %v1721_v46 = vsel %vm1648_vm9, %v1611_v45, %v1685_v24  ;;  %v1971_v45 = vsel %vm268_vm1, %v1942_v19, 0.0 }
 0x236   : > { %v1530_v1 = vadd.f32 %v1447_v34, %v1384_v11  ;;  %v1799_v52 = vrot.slane %v1721_v46, 7  ;;  %v1907_v4 = vrot.slane %v1721_v46, 1  ;;  %2068 = vrot.lane.b32.xlu1 %v1721_v46, %s3642_s27  ;;  %v1720_v51 = vsel %vm1647_vm10, %v1610_v42, %v1684_v31 }
 0x237   : > { %v1572_v22 = vmul.f32 %v4517_v2, %v1531_v0  ;;  %v1781_v63 = vrot.slane %v1720_v51, 7  ;;  %v1889_v50 = vrot.slane %v1720_v51, 1  ;;  %2066 = vrot.lane.b32.xlu0 %v1720_v51, %s3642_s27 }
 0x238   : > { %v1571_v53 = vmul.f32 %v4517_v2, %v1530_v1  ;;  %v1307_v21 = vpop.permute.xlu1 %1306 }
 0x239   : > { %v1613_v47 = vadd.f32 %v4522_v62, %v1572_v22  ;;  %v1305_v60 = vpop.permute.xlu0 %1304  ;;  %v1925_v16 = vsel %vm436_vm0, %v1889_v50, %v1907_v4  ;;  %v1943_v33 = vsel %vm436_vm0, %v1907_v4, %v1889_v50  ;;  %v4814_v42 = vsel %vm333_vm3, %v1781_v63, %v1799_v52 }
 0x23a   : > { %v1612_v44 = vadd.f32 %v4522_v62, %v1571_v53  ;;  %2208 = vrot.lane.b32.xlu1 %v1971_v45, %s3643_s30  ;;  %v1387_v48 = vadd.f32 %v4462_v54, %v1307_v21  ;;  %v4821_v24 = vsel %vm333_vm3, %v1799_v52, %v1781_v63  ;;  %v1386_v11 = vadd.f32 %v1305_v60, %v4466_v57 }
 0x23b   : > { %2210 = vrot.lane.b32.xlu0 %v1925_v16, %s3643_s30  ;;  %vm1650_vm11 = vcmp.ge.f32.partialorder %v1613_v47, 0.0  ;;  %v1687_v19 = vmul.f32 %v4528_v17, %v1613_v47 }
 0x23c   : > { %v1453_v30 = vpop.permute.xlu1 %1452  ;;  %vm1649_vm12 = vcmp.ge.f32.partialorder %v1612_v44, 0.0  ;;  %v1686_v31 = vmul.f32 %v4528_v17, %v1612_v44 }
 0x23d   : > { %v1533_v0 = vadd.f32 %v1453_v30, %v1387_v48  ;;  %v1451_v34 = vpop.permute.xlu0 %1450  ;;  %v1723_v46 = vsel %vm1650_vm11, %v1613_v47, %v1687_v19  ;;  %v1973_v47 = vsel %vm268_vm1, %v1943_v33, 0.0 }
 0x23e   : > { %v1532_v1 = vadd.f32 %v1451_v34, %v1386_v11  ;;  %v1800_v54 = vrot.slane %v1723_v46, 7  ;;  %v1908_v4 = vrot.slane %v1723_v46, 1  ;;  %2072 = vrot.lane.b32.xlu1 %v1723_v46, %s3642_s27  ;;  %v1722_v51 = vsel %vm1649_vm12, %v1612_v44, %v1686_v31 }
 0x23f   : > { %v1574_v22 = vmul.f32 %v4517_v2, %v1533_v0  ;;  %v1782_v50 = vrot.slane %v1722_v51, 7  ;;  %v1890_v52 = vrot.slane %v1722_v51, 1  ;;  %2070 = vrot.lane.b32.xlu0 %v1722_v51, %s3642_s27 }
 0x240   : > { %v1573_v57 = vmul.f32 %v4517_v2, %v1532_v1  ;;  %v1311_v63 = vpop.permute.xlu1 %1310 }
 0x241   : > { %v1615_v53 = vadd.f32 %v4522_v62, %v1574_v22  ;;  %v1309_v21 = vpop.permute.xlu0 %1308  ;;  %v1926_v60 = vsel %vm436_vm0, %v1890_v52, %v1908_v4  ;;  %v1944_v45 = vsel %vm436_vm0, %v1908_v4, %v1890_v52  ;;  %v4840_v44 = vsel %vm333_vm3, %v1782_v50, %v1800_v54 }
 0x242   : > { %v1614_v16 = vadd.f32 %v4522_v62, %v1573_v57  ;;  %2212 = vrot.lane.b32.xlu1 %v1973_v47, %s3643_s30  ;;  %v1389_v48 = vadd.f32 %v4474_v58, %v1311_v63  ;;  %v4847_v19 = vsel %vm333_vm3, %v1800_v54, %v1782_v50  ;;  %v1388_v11 = vadd.f32 %v1309_v21, %v4478_v55 }
 0x243   : > { %2214 = vrot.lane.b32.xlu0 %v1926_v60, %s3643_s30  ;;  %vm1652_vm13 = vcmp.ge.f32.partialorder %v1615_v53, 0.0  ;;  %v1689_v33 = vmul.f32 %v4528_v17, %v1615_v53 }
 0x244   : > { %v1457_v30 = vpop.permute.xlu1 %1456  ;;  %vm1651_vm14 = vcmp.ge.f32.partialorder %v1614_v16, 0.0  ;;  %v1688_v31 = vmul.f32 %v4528_v17, %v1614_v16 }
 0x245   : > { %v1535_v0 = vadd.f32 %v1457_v30, %v1389_v48  ;;  %v1455_v34 = vpop.permute.xlu0 %1454  ;;  %v1725_v46 = vsel %vm1652_vm13, %v1615_v53, %v1689_v33  ;;  %v1975_v53 = vsel %vm268_vm1, %v1944_v45, 0.0 }
 0x246   : > { %v1534_v1 = vadd.f32 %v1455_v34, %v1388_v11  ;;  %v1801_v58 = vrot.slane %v1725_v46, 7  ;;  %v1909_v4 = vrot.slane %v1725_v46, 1  ;;  %2076 = vrot.lane.b32.xlu1 %v1725_v46, %s3642_s27  ;;  %v1724_v51 = vsel %vm1651_vm14, %v1614_v16, %v1688_v31 }
 0x247   : > { %v1576_v22 = vmul.f32 %v4517_v2, %v1535_v0  ;;  %v1783_v52 = vrot.slane %v1724_v51, 7  ;;  %v1891_v54 = vrot.slane %v1724_v51, 1  ;;  %2074 = vrot.lane.b32.xlu0 %v1724_v51, %s3642_s27 }
 0x248   : > { %v1575_v55 = vmul.f32 %v4517_v2, %v1534_v1  ;;  %v1315_v50 = vpop.permute.xlu1 %1314 }
 0x249   : > { %v1617_v57 = vadd.f32 %v4522_v62, %v1576_v22  ;;  %v1313_v63 = vpop.permute.xlu0 %1312  ;;  %v1927_v21 = vsel %vm436_vm0, %v1891_v54, %v1909_v4  ;;  %v1945_v47 = vsel %vm436_vm0, %v1909_v4, %v1891_v54  ;;  %v4866_v16 = vsel %vm333_vm3, %v1783_v52, %v1801_v58 }
 0x24a   : > { %v1616_v60 = vadd.f32 %v4522_v62, %v1575_v55  ;;  %2216 = vrot.lane.b32.xlu1 %v1975_v53, %s3643_s30  ;;  %v1391_v48 = vadd.f32 %v4486_v25, %v1315_v50  ;;  %v4873_v33 = vsel %vm333_vm3, %v1801_v58, %v1783_v52  ;;  %v1390_v11 = vadd.f32 %v1313_v63, %v4490_v26 }
 0x24b   : > { %2218 = vrot.lane.b32.xlu0 %v1927_v21, %s3643_s30  ;;  %vm1654_vm15 = vcmp.ge.f32.partialorder %v1617_v57, 0.0  ;;  %v1691_v45 = vmul.f32 %v4528_v17, %v1617_v57 }
 0x24c   : > { %v1461_v30 = vpop.permute.xlu1 %1460  ;;  %vm1653_vm7 = vcmp.ge.f32.partialorder %v1616_v60, 0.0  ;;  %v1690_v31 = vmul.f32 %v4528_v17, %v1616_v60 }
 0x24d   : > { %v1537_v0 = vadd.f32 %v1461_v30, %v1391_v48  ;;  %v1459_v34 = vpop.permute.xlu0 %1458  ;;  %v1727_v46 = vsel %vm1654_vm15, %v1617_v57, %v1691_v45  ;;  %v1977_v57 = vsel %vm268_vm1, %v1945_v47, 0.0 }
 0x24e   : > { %v1536_v1 = vadd.f32 %v1459_v34, %v1390_v11  ;;  %v1802_v25 = vrot.slane %v1727_v46, 7  ;;  %v1910_v4 = vrot.slane %v1727_v46, 1  ;;  %2080 = vrot.lane.b32.xlu1 %v1727_v46, %s3642_s27  ;;  %v1726_v51 = vsel %vm1653_vm7, %v1616_v60, %v1690_v31 }
 0x24f   : > { %v1578_v22 = vmul.f32 %v4517_v2, %v1537_v0  ;;  %v1784_v54 = vrot.slane %v1726_v51, 7  ;;  %v1892_v58 = vrot.slane %v1726_v51, 1  ;;  %2078 = vrot.lane.b32.xlu0 %v1726_v51, %s3642_s27 }
 0x250   : > { %v1577_v26 = vmul.f32 %v4517_v2, %v1536_v1  ;;  %v1319_v52 = vpop.permute.xlu1 %1318 }
 0x251   : > { %v1619_v55 = vadd.f32 %v4522_v62, %v1578_v22  ;;  %v1317_v50 = vpop.permute.xlu0 %1316  ;;  %v1928_v63 = vsel %vm436_vm0, %v1892_v58, %v1910_v4  ;;  %v1946_v53 = vsel %vm436_vm0, %v1910_v4, %v1892_v58  ;;  %v4892_v60 = vsel %vm333_vm3, %v1784_v54, %v1802_v25 }
 0x252   : > { %v1618_v21 = vadd.f32 %v4522_v62, %v1577_v26  ;;  %2220 = vrot.lane.b32.xlu1 %v1977_v57, %s3643_s30  ;;  %v1393_v48 = vadd.f32 %v4498_v56, %v1319_v52  ;;  %v4899_v45 = vsel %vm333_vm3, %v1802_v25, %v1784_v54  ;;  %v1392_v11 = vadd.f32 %v1317_v50, %v4502_v61 }
 0x253   : > { %2222 = vrot.lane.b32.xlu0 %v1928_v63, %s3643_s30  ;;  %vm1656_vm8 = vcmp.ge.f32.partialorder %v1619_v55, 0.0  ;;  %v1693_v47 = vmul.f32 %v4528_v17, %v1619_v55  ;;  %v1979_v52 = vsel %vm268_vm1, %v1946_v53, 0.0 }
 0x254   : > { %v1465_v30 = vpop.permute.xlu1 %1464  ;;  %vm1655_vm9 = vcmp.ge.f32.partialorder %v1618_v21, 0.0  ;;  %v1692_v31 = vmul.f32 %v4528_v17, %v1618_v21 }
 0x255   : > { %v1539_v0 = vadd.f32 %v1465_v30, %v1393_v48  ;;  %v1463_v34 = vpop.permute.xlu0 %1462  ;;  %v1729_v46 = vsel %vm1656_vm8, %v1619_v55, %v1693_v47 }
 0x256   : > { %v1538_v1 = vadd.f32 %v1463_v34, %v1392_v11  ;;  %v1803_v56 = vrot.slane %v1729_v46, 7  ;;  %v1911_v4 = vrot.slane %v1729_v46, 1  ;;  %2084 = vrot.lane.b32.xlu1 %v1729_v46, %s3642_s27  ;;  %v1728_v51 = vsel %vm1655_vm9, %v1618_v21, %v1692_v31 }
 0x257   : > { %v1580_v22 = vmul.f32 %v4517_v2, %v1539_v0  ;;  %v1785_v58 = vrot.slane %v1728_v51, 7  ;;  %v1893_v25 = vrot.slane %v1728_v51, 1  ;;  %2082 = vrot.lane.b32.xlu0 %v1728_v51, %s3642_s27 }
 0x258   : > { %v1579_v61 = vmul.f32 %v4517_v2, %v1538_v1  ;;  %v2029_v21 = vpop.permute.xlu1 %2028 }
 0x259   : > { %v1621_v54 = vadd.f32 %v4522_v62, %v1580_v22  ;;  %v2027_v26 = vpop.permute.xlu0 %2026  ;;  %v1929_v55 = vsel %vm436_vm0, %v1893_v25, %v1911_v4  ;;  %v1947_v50 = vsel %vm436_vm0, %v1911_v4, %v1893_v25  ;;  %v4918_v63 = vsel %vm333_vm3, %v1785_v58, %v1803_v56 }
 0x25a   : > { %v1620_v57 = vadd.f32 %v4522_v62, %v1579_v61  ;;  %2224 = vrot.lane.b32.xlu1 %v1979_v52, %s3643_s30  ;;  %v4924_v53 = vsel %vm333_vm3, %v1803_v56, %v1785_v58  ;;  %v1844_v62 = vsel %vm265_vm6, %v4557_v23, 0.0  ;;  %v2277_v61 = vsel %vm775_vm2, %v4550_v8, %v2029_v21 }
 0x25b   : > { %2226 = vrot.lane.b32.xlu0 %v1929_v55, %s3643_s30  ;;  %vm1658_vm10 = vcmp.ge.f32.partialorder %v1621_v54, 0.0  ;;  %v1695_v2 = vmul.f32 %v4528_v17, %v1621_v54  ;;  %v2276_v47 = vsel %vm775_vm2, %v1844_v62, %v2027_v26  ;;  %v1848_v21 = vsel %vm265_vm6, %v4609_v39, 0.0 }
 0x25c   : > { %vm1657_vm11 = vcmp.ge.f32.partialorder %v1620_v57, 0.0  ;;  %v1694_v48 = vmul.f32 %v4528_v17, %v1620_v57  ;;  %v1981_v17 = vsel %vm268_vm1, %v1947_v50, 0.0  ;;  %v1850_v39 = vsel %vm265_vm6, %v4635_v5, 0.0 }
 0x25d   : > { %v2171_v11 = vpop.permute.xlu0 %2170  ;;  %v1731_v30 = vsel %vm1658_vm10, %v1621_v54, %v1695_v2  ;;  %v1846_v54 = vsel %vm265_vm6, %v4583_v32, 0.0  ;;  %v1852_v5 = vsel %vm265_vm6, %v4661_v35, 0.0  ;;  %v1854_v35 = vsel %vm265_vm6, %v4687_v36, 0.0 }
 0x25e   : > { %v2312_v31 = vsel %vm810_vm4, %v2276_v47, %v2171_v11  ;;  %2088 = vrot.lane.b32.xlu1 %v1731_v30, %s3642_s27  ;;  %v1804_v0 = vrot.slane %v1731_v30, 7  ;;  %v1912_v34 = vrot.slane %v1731_v30, 1  ;;  %v1730_v46 = vsel %vm1657_vm11, %v1620_v57, %v1694_v48 }
 0x25f   : > { %2086 = vrot.lane.b32.xlu0 %v1730_v46, %s3642_s27  ;;  %v1786_v1 = vrot.slane %v1730_v46, 7  ;;  %v1894_v56 = vrot.slane %v1730_v46, 1  ;;  %3472 = vmatprep.mubr.msk.f32.mxu1 %vm848_vm5, %v2312_v31  ;;  %v1856_v36 = vsel %vm265_vm6, %v4713_v9, 0.0  ;;  %v1858_v9 = vsel %vm265_vm6, %v4739_v38, 0.0 }
 0x260   : > { %v2033_v23 = vpop.permute.xlu1 %2032  ;;  %v1860_v38 = vsel %vm265_vm6, %v4767_v13, 0.0  ;;  %v1862_v13 = vsel %vm265_vm6, %v4795_v12, 0.0  ;;  %v1864_v12 = vsel %vm265_vm6, %v4821_v24, 0.0  ;;  %v1866_v24 = vsel %vm265_vm6, %v4847_v19, 0.0 }
 0x261   : > { %v2031_v4 = vpop.permute.xlu0 %2030  ;;  %v1930_v51 = vsel %vm436_vm0, %v1894_v56, %v1912_v34  ;;  %v1948_v22 = vsel %vm436_vm0, %v1912_v34, %v1894_v56  ;;  %v4943_v58 = vsel %vm333_vm3, %v1786_v1, %v1804_v0  ;;  %v4948_v25 = vsel %vm333_vm3, %v1804_v0, %v1786_v1 }
 0x262   : > { %2228 = vrot.lane.b32.xlu1 %v1981_v17, %s3643_s30  ;;  %v2278_v52 = vsel %vm775_vm2, %v1846_v54, %v2031_v4  ;;  %v1983_v57 = vsel %vm268_vm1, %v1948_v22, 0.0  ;;  %v2279_v7 = vsel %vm775_vm2, %v4576_v40, %v2033_v23  ;;  %v1868_v19 = vsel %vm265_vm6, %v4873_v33, 0.0 }
 0x263   : > { %2230 = vrot.lane.b32.xlu0 %v1930_v51, %s3643_s30  ;;  %v1870_v33 = vsel %vm265_vm6, %v4899_v45, 0.0  ;;  %v1872_v45 = vsel %vm265_vm6, %v4924_v53, 0.0  ;;  %v1874_v53 = vsel %vm265_vm6, %v4948_v25, 0.0 }
 0x264   : > { %v2173_v26 = vpop.permute.xlu1 %2172 }
 0x265   : > { %v2313_v55 = vsel %vm810_vm4, %v2277_v61, %v2173_v26  ;;  %v2175_v50 = vpop.permute.xlu0 %2174 }
 0x266   : > { %v2314_v2 = vsel %vm810_vm4, %v2278_v52, %v2175_v50  ;;  %2232 = vrot.lane.b32.xlu1 %v1983_v57, %s3643_s30  ;;  %3473 = vmatmul.mubr.msk.f32.gmra.mrb[2].mxu1 %vm848_vm5, %v2313_v55 }
 0x267   : > { %3475 = vmatprep.mubr.msk.f32.mxu1 %vm848_vm5, %v2314_v2  ;;  %3576 = vrot.lane.b32.xlu0 %v3641_v3, %s3642_s27 }
 0x268   : > { %v2037_v8 = vpop.permute.xlu1 %2036 }
 0x269   : > { %v2035_v32 = vpop.permute.xlu0 %2034  ;;  %v2281_v40 = vsel %vm775_vm2, %v4602_v20, %v2037_v8 }
 0x26a   : > { %3581 = vrot.lane.b32.xlu1 %v4229_v14, %s3643_s30  ;;  %v2280_v48 = vsel %vm775_vm2, %v1848_v21, %v2035_v32 }
 0x26c   : > { %v2177_v62 = vpop.permute.xlu1 %2176 }
 0x26d   : > { %v2315_v47 = vsel %vm810_vm4, %v2279_v7, %v2177_v62  ;;  %v2179_v11 = vpop.permute.xlu0 %2178 }
 0x26e   : > { %v2316_v3 = vsel %vm810_vm4, %v2280_v48, %v2179_v11  ;;  %3476 = vmatmul.mubr.msk.f32.gmra.mrb[4].mxu1 %vm848_vm5, %v2315_v47 }
 0x26f   : > { %3478 = vmatprep.mubr.msk.f32.mxu1 %vm848_vm5, %v2316_v3 }
 0x270   : > { %v2041_v14 = vpop.permute.xlu1 %2040 }
 0x271   : > { %v2039_v30 = vpop.permute.xlu0 %2038  ;;  %v2283_v20 = vsel %vm775_vm2, %v4628_v37, %v2041_v14 }
 0x272   : > { %v2282_v0 = vsel %vm775_vm2, %v1850_v39, %v2039_v30 }
 0x274   : > { %v2181_v31 = vpop.permute.xlu1 %2180 }
 0x275   : > { %v2317_v34 = vsel %vm810_vm4, %v2281_v40, %v2181_v31  ;;  %v2183_v46 = vpop.permute.xlu0 %2182 }
 0x276   : > { %v2318_v1 = vsel %vm810_vm4, %v2282_v0, %v2183_v46  ;;  %3479 = vmatmul.mubr.msk.f32.gmra.mrb[6].mxu1 %vm848_vm5, %v2317_v34 }
 0x277   : > { %3481 = vmatprep.mubr.msk.f32.mxu1 %vm848_vm5, %v2318_v1 }
 0x278   : > { %v2045_v56 = vpop.permute.xlu1 %2044 }
 0x279   : > { %v2043_v23 = vpop.permute.xlu0 %2042  ;;  %v2285_v37 = vsel %vm775_vm2, %v4654_v18, %v2045_v56 }
 0x27a   : > { %v2284_v17 = vsel %vm775_vm2, %v1852_v5, %v2043_v23 }
 0x27c   : > { %v2185_v4 = vpop.permute.xlu1 %2184 }
 0x27d   : > { %v2319_v51 = vsel %vm810_vm4, %v2283_v20, %v2185_v4  ;;  %v2187_v22 = vpop.permute.xlu0 %2186 }
 0x27e   : > { %v2320_v61 = vsel %vm810_vm4, %v2284_v17, %v2187_v22  ;;  %3482 = vmatmul.mubr.msk.f32.gmra.mrb[8].mxu1 %vm848_vm5, %v2319_v51 }
 0x27f   : > { %3484 = vmatprep.mubr.msk.f32.mxu1 %vm848_vm5, %v2320_v61 }
 0x280   : > { %v2049_v54 = vpop.permute.xlu1 %2048 }
 0x281   : > { %v2047_v26 = vpop.permute.xlu0 %2046  ;;  %v2287_v18 = vsel %vm775_vm2, %v4680_v43, %v2049_v54 }
 0x282   : > { %v2286_v55 = vsel %vm775_vm2, %v1854_v35, %v2047_v26 }
 0x284   : > { %v2189_v52 = vpop.permute.xlu1 %2188 }
 0x285   : > { %v2321_v50 = vsel %vm810_vm4, %v2285_v37, %v2189_v52  ;;  %v2191_v57 = vpop.permute.xlu0 %2190 }
 0x286   : > { %v2322_v2 = vsel %vm810_vm4, %v2286_v55, %v2191_v57  ;;  %3485 = vmatmul.mubr.msk.f32.gmra.mrb[10].mxu1 %vm848_vm5, %v2321_v50 }
 0x287   : > { %3487 = vmatprep.mubr.msk.f32.mxu1 %vm848_vm5, %v2322_v2 }
 0x288   : > { %v2053_v8 = vpop.permute.xlu1 %2052 }
 0x289   : > { %v2051_v32 = vpop.permute.xlu0 %2050  ;;  %v2289_v43 = vsel %vm775_vm2, %v4706_v49, %v2053_v8 }
 0x28a   : > { %v2288_v21 = vsel %vm775_vm2, %v1856_v36, %v2051_v32 }
 0x28c   : > { %v2193_v7 = vpop.permute.xlu1 %2192 }
 0x28d   : > { %v2323_v62 = vsel %vm810_vm4, %v2287_v18, %v2193_v7  ;;  %v2195_v48 = vpop.permute.xlu0 %2194 }
 0x28e   : > { %v2324_v47 = vsel %vm810_vm4, %v2288_v21, %v2195_v48  ;;  %3488 = vmatmul.mubr.msk.f32.gmra.mrb[12].mxu1 %vm848_vm5, %v2323_v62 }
 0x28f   : > { %3490 = vmatprep.mubr.msk.f32.mxu1 %vm848_vm5, %v2324_v47 }
 0x290   : > { %v2057_v11 = vpop.permute.xlu1 %2056 }
 0x291   : > { %v2055_v3 = vpop.permute.xlu0 %2054  ;;  %v2291_v49 = vsel %vm775_vm2, %v4732_v28, %v2057_v11 }
 0x292   : > { %v2290_v30 = vsel %vm775_vm2, %v1858_v9, %v2055_v3 }
 0x294   : > { %v2197_v14 = vpop.permute.xlu1 %2196 }
 0x295   : > { %v2325_v40 = vsel %vm810_vm4, %v2289_v43, %v2197_v14  ;;  %v2199_v39 = vpop.permute.xlu0 %2198 }
 0x296   : > { %v2326_v31 = vsel %vm810_vm4, %v2290_v30, %v2199_v39  ;;  %3491 = vmatmul.mubr.msk.f32.gmra.mrb[14].mxu1 %vm848_vm5, %v2325_v40 }
 0x297   : > { %3493 = vmatprep.mubr.msk.f32.mxu1 %vm848_vm5, %v2326_v31 }
 0x298   : > { %v2061_v0 = vpop.permute.xlu1 %2060 }
 0x299   : > { %v2059_v34 = vpop.permute.xlu0 %2058  ;;  %v2293_v28 = vsel %vm775_vm2, %v4758_v59, %v2061_v0 }
 0x29a   : > { %v2292_v1 = vsel %vm775_vm2, %v1860_v38, %v2059_v34 }
 0x29c   : > { %v2201_v46 = vpop.permute.xlu1 %2200 }
 0x29d   : > { %v2327_v56 = vsel %vm810_vm4, %v2291_v49, %v2201_v46  ;;  %v2203_v23 = vpop.permute.xlu0 %2202 }
 0x29e   : > { %v2328_v20 = vsel %vm810_vm4, %v2292_v1, %v2203_v23  ;;  %3494 = vmatmul.mubr.msk.f32.gmra.mrb[16].mxu1 %vm848_vm5, %v2327_v56 }
 0x29f   : > { %3496 = vmatprep.mubr.msk.f32.mxu1 %vm848_vm5, %v2328_v20 }
 0x2a0   : > { %v2065_v5 = vpop.permute.xlu1 %2064 }
 0x2a1   : > { %v2063_v4 = vpop.permute.xlu0 %2062  ;;  %v2295_v59 = vsel %vm775_vm2, %v4788_v27, %v2065_v5 }
 0x2a2   : > { %v2294_v51 = vsel %vm775_vm2, %v1862_v13, %v2063_v4 }
 0x2a4   : > { %v2205_v17 = vpop.permute.xlu1 %2204 }
 0x2a5   : > { %v2329_v22 = vsel %vm810_vm4, %v2293_v28, %v2205_v17  ;;  %v2207_v61 = vpop.permute.xlu0 %2206 }
 0x2a6   : > { %v2330_v54 = vsel %vm810_vm4, %v2294_v51, %v2207_v61  ;;  %3497 = vmatmul.mubr.msk.f32.gmra.mrb[18].mxu1 %vm848_vm5, %v2329_v22 }
 0x2a7   : > { %3499 = vmatprep.mubr.msk.f32.mxu1 %vm848_vm5, %v2330_v54 }
 0x2a8   : > { %v2069_v26 = vpop.permute.xlu1 %2068 }
 0x2a9   : > { %v2067_v37 = vpop.permute.xlu0 %2066  ;;  %v2297_v27 = vsel %vm775_vm2, %v4814_v42, %v2069_v26 }
 0x2aa   : > { %v2296_v52 = vsel %vm775_vm2, %v1864_v12, %v2067_v37 }
 0x2ac   : > { %v2209_v35 = vpop.permute.xlu1 %2208 }
 0x2ad   : > { %v2331_v55 = vsel %vm810_vm4, %v2295_v59, %v2209_v35  ;;  %v2211_v50 = vpop.permute.xlu0 %2210 }
 0x2ae   : > { %v2332_v57 = vsel %vm810_vm4, %v2296_v52, %v2211_v50  ;;  %3500 = vmatmul.mubr.msk.f32.gmra.mrb[20].mxu1 %vm848_vm5, %v2331_v55 }
 0x2af   : > { %3502 = vmatprep.mubr.msk.f32.mxu1 %vm848_vm5, %v2332_v57 }
 0x2b0   : > { %v2073_v2 = vpop.permute.xlu1 %2072 }
 0x2b1   : > { %v2071_v8 = vpop.permute.xlu0 %2070  ;;  %v2299_v42 = vsel %vm775_vm2, %v4840_v44, %v2073_v2 }
 0x2b2   : > { %v2298_v18 = vsel %vm775_vm2, %v1866_v24, %v2071_v8 }
 0x2b4   : > { %v2213_v32 = vpop.permute.xlu1 %2212 }
 0x2b5   : > { %v2333_v36 = vsel %vm810_vm4, %v2297_v27, %v2213_v32  ;;  %v2215_v7 = vpop.permute.xlu0 %2214 }
 0x2b6   : > { %v2334_v21 = vsel %vm810_vm4, %v2298_v18, %v2215_v7  ;;  %3503 = vmatmul.mubr.msk.f32.gmra.mrb[22].mxu1 %vm848_vm5, %v2333_v36 }
 0x2b7   : > { %3505 = vmatprep.mubr.msk.f32.mxu1 %vm848_vm5, %v2334_v21 }
 0x2b8   : > { %v2077_v62 = vpop.permute.xlu1 %2076 }
 0x2b9   : > { %v2075_v48 = vpop.permute.xlu0 %2074  ;;  %v2301_v44 = vsel %vm775_vm2, %v4866_v16, %v2077_v62 }
 0x2ba   : > { %v2300_v11 = vsel %vm775_vm2, %v1868_v19, %v2075_v48 }
 0x2bc   : > { %v2217_v47 = vpop.permute.xlu1 %2216 }
 0x2bd   : > { %v2335_v3 = vsel %vm810_vm4, %v2299_v42, %v2217_v47  ;;  %v2219_v43 = vpop.permute.xlu0 %2218 }
 0x2be   : > { %v2336_v9 = vsel %vm810_vm4, %v2300_v11, %v2219_v43  ;;  %3506 = vmatmul.mubr.msk.f32.gmra.mrb[24].mxu1 %vm848_vm5, %v2335_v3 }
 0x2bf   : > { %3508 = vmatprep.mubr.msk.f32.mxu1 %vm848_vm5, %v2336_v9 }
 0x2c0   : > { %v2081_v14 = vpop.permute.xlu1 %2080 }
 0x2c1   : > { %v2079_v30 = vpop.permute.xlu0 %2078  ;;  %v2303_v16 = vsel %vm775_vm2, %v4892_v60, %v2081_v14 }
 0x2c2   : > { %v2302_v39 = vsel %vm775_vm2, %v1870_v33, %v2079_v30 }
 0x2c4   : > { %v2221_v40 = vpop.permute.xlu1 %2220 }
 0x2c5   : > { %v2337_v31 = vsel %vm810_vm4, %v2301_v44, %v2221_v40  ;;  %v2223_v0 = vpop.permute.xlu0 %2222 }
 0x2c6   : > { %v2338_v34 = vsel %vm810_vm4, %v2302_v39, %v2223_v0  ;;  %3509 = vmatmul.mubr.msk.f32.gmra.mrb[26].mxu1 %vm848_vm5, %v2337_v31 }
 0x2c7   : > { %3511 = vmatprep.mubr.msk.f32.mxu1 %vm848_vm5, %v2338_v34 }
 0x2c8   : > { %v2085_v49 = vpop.permute.xlu1 %2084 }
 0x2c9   : > { %v2083_v38 = vpop.permute.xlu0 %2082  ;;  %v2305_v60 = vsel %vm775_vm2, %v4918_v63, %v2085_v49 }
 0x2ca   : > { %v2304_v1 = vsel %vm775_vm2, %v1872_v45, %v2083_v38 }
 0x2cc   : > { %v2225_v46 = vpop.permute.xlu1 %2224 }
 0x2cd   : > { %v2339_v56 = vsel %vm810_vm4, %v2303_v16, %v2225_v46  ;;  %v2227_v23 = vpop.permute.xlu0 %2226 }
 0x2ce   : > { %v2340_v20 = vsel %vm810_vm4, %v2304_v1, %v2227_v23  ;;  %3512 = vmatmul.mubr.msk.f32.gmra.mrb[28].mxu1 %vm848_vm5, %v2339_v56 }
 0x2cf   : > { %3514 = vmatprep.mubr.msk.f32.mxu1 %vm848_vm5, %v2340_v20 }
 0x2d0   : > { %v2089_v5 = vpop.permute.xlu1 %2088 }
 0x2d1   : > { %v2087_v4 = vpop.permute.xlu0 %2086  ;;  %v2307_v61 = vsel %vm775_vm2, %v4943_v58, %v2089_v5  ;;  %v5305_v5 = vld [vmem:[%s5523_s3 + $0x2] ss:$0 sm:$0xff] }
 0x2d2   : > { %v2306_v13 = vsel %vm775_vm2, %v1874_v53, %v2087_v4 }
 0x2d4   : > { %v2229_v28 = vpop.permute.xlu1 %2228 }
 0x2d5   : > { %v2341_v17 = vsel %vm810_vm4, %v2305_v60, %v2229_v28  ;;  %v2231_v51 = vpop.permute.xlu0 %2230  ;;  %v5310_v28 = vld [vmem:[%s5523_s3 + $0x3] ss:$0 sm:$0xff] }
 0x2d6   : > { %v2342_v22 = vsel %vm810_vm4, %v2306_v13, %v2231_v51  ;;  %3515 = vmatmul.mubr.msk.f32.gmra.mrb[30].mxu1 %vm848_vm5, %v2341_v17 }
 0x2d7   : > { %3517 = vmatprep.mubr.msk.f32.mxu1 %vm848_vm5, %v2342_v22 }
 0x2d8   : > { %v2233_v63 = vpop.permute.xlu1 %2232 }
 0x2d9   : > { %v2343_v54 = vsel %vm810_vm4, %v2307_v61, %v2233_v63  ;;  %v3577_v6 = vpop.permute.xlu0 %3576 }
 0x2da   : > { %3518 = vmatmul.mubr.msk.f32.gmra.mrb[32].mxu1 %vm848_vm5, %v2343_v54  ;;  %v3579_v25 = vunpack.i.h.bf16 %v3577_v6  ;;  %v3578_v26 = vunpack.i.l.bf16 %v3577_v6  ;;  %v3585_v54 = vld [vmem:[%s3720_s9 + $0x8] sm:$0xff] }
 0x2dc   : > { %v3582_v37 = vpop.permute.xlu1 %3581  ;;  %v2308_v59 = vsel %vm775_vm2, %v4320_v41, %v3578_v26  ;;  %v2309_v12 = vsel %vm775_vm2, %v4312_v15, %v3579_v25  ;;  %v3586_v26 = vld [vmem:[%s3720_s9] sm:$0xff] }
 0x2dd   : > { %v3584_v35 = vunpack.i.h.bf16 %v3582_v37  ;;  %v3583_v52 = vunpack.i.l.bf16 %v3582_v37 }
 0x2df   : > { %v2344_v55 = vsel %vm810_vm4, %v2308_v59, %v3583_v52  ;;  %v2345_v58 = vsel %vm810_vm4, %v2309_v12, %v3584_v35 }
 0x2e0   : > { %3520 = vmatprep.mubr.msk.f32.mxu1 %vm848_vm5, %v2344_v55 }
 0x2e1   : > { %3521 = vmatmul.mubr.msk.f32.gmra.mrb[34].mxu1 %vm848_vm5, %v2345_v58 }
 0x339   : > { %v5120_v50 = vpop.f32.mrb[2].mxu1 }
 0x33a   : > { %2736 = vrot.lane.b32.xlu1 %v5120_v50, %s3644_s16  ;;  %v5124_v57 = vpop.f32.mrb[3].mxu1 }
 0x33b   : > { %2734 = vrot.lane.b32.xlu0 %v5124_v57, %s3644_s16 }
 0x341   : > { %v5128_v15 = vpop.f32.mrb[4].mxu1 }
 0x342   : > { %2740 = vrot.lane.b32.xlu1 %v5128_v15, %s3644_s16  ;;  %v5132_v41 = vpop.f32.mrb[5].mxu1 }
 0x343   : > { %2738 = vrot.lane.b32.xlu0 %v5132_v41, %s3644_s16 }
 0x346   : > { %2866 = vrot.lane.b32.xlu1 %v5128_v15, %s3645_s17 }
 0x347   : > { %2864 = vrot.lane.b32.xlu0 %v5132_v41, %s3645_s17 }
 0x349   : > { %v5140_v2 = vpop.f32.mrb[6].mxu1 }
 0x34a   : > { %2744 = vrot.lane.b32.xlu1 %v5140_v2, %s3644_s16  ;;  %v5144_v8 = vpop.f32.mrb[7].mxu1 }
 0x34b   : > { %2742 = vrot.lane.b32.xlu0 %v5144_v8, %s3644_s16 }
 0x34e   : > { %2870 = vrot.lane.b32.xlu1 %v5140_v2, %s3645_s17 }
 0x34f   : > { %2868 = vrot.lane.b32.xlu0 %v5144_v8, %s3645_s17 }
 0x351   : > { %v5152_v27 = vpop.f32.mrb[8].mxu1 }
 0x352   : > { %2748 = vrot.lane.b32.xlu1 %v5152_v27, %s3644_s16  ;;  %v5156_v24 = vpop.f32.mrb[9].mxu1 }
 0x353   : > { %2746 = vrot.lane.b32.xlu0 %v5156_v24, %s3644_s16 }
 0x356   : > { %2874 = vrot.lane.b32.xlu1 %v5152_v27, %s3645_s17 }
 0x357   : > { %2872 = vrot.lane.b32.xlu0 %v5156_v24, %s3645_s17 }
 0x359   : > { %v5164_v32 = vpop.f32.mrb[10].mxu1 }
 0x35a   : > { %2752 = vrot.lane.b32.xlu1 %v5164_v32, %s3644_s16  ;;  %v5168_v18 = vpop.f32.mrb[11].mxu1 }
 0x35b   : > { %2750 = vrot.lane.b32.xlu0 %v5168_v18, %s3644_s16 }
 0x35e   : > { %2878 = vrot.lane.b32.xlu1 %v5164_v32, %s3645_s17 }
 0x35f   : > { %2876 = vrot.lane.b32.xlu0 %v5168_v18, %s3645_s17 }
 0x361   : > { %v5176_v36 = vpop.f32.mrb[12].mxu1 }
 0x362   : > { %2756 = vrot.lane.b32.xlu1 %v5176_v36, %s3644_s16  ;;  %v5180_v7 = vpop.f32.mrb[13].mxu1 }
 0x363   : > { %2754 = vrot.lane.b32.xlu0 %v5180_v7, %s3644_s16 }
 0x366   : > { %2882 = vrot.lane.b32.xlu1 %v5176_v36, %s3645_s17 }
 0x367   : > { %2880 = vrot.lane.b32.xlu0 %v5180_v7, %s3645_s17 }
 0x369   : > { %v5188_v21 = vpop.f32.mrb[14].mxu1 }
 0x36a   : > { %2760 = vrot.lane.b32.xlu1 %v5188_v21, %s3644_s16  ;;  %v5192_v62 = vpop.f32.mrb[15].mxu1 }
 0x36b   : > { %2758 = vrot.lane.b32.xlu0 %v5192_v62, %s3644_s16 }
 0x36e   : > { %2886 = vrot.lane.b32.xlu1 %v5188_v21, %s3645_s17 }
 0x36f   : > { %2884 = vrot.lane.b32.xlu0 %v5192_v62, %s3645_s17 }
 0x371   : > { %v5200_v48 = vpop.f32.mrb[16].mxu1 }
 0x372   : > { %2764 = vrot.lane.b32.xlu1 %v5200_v48, %s3644_s16  ;;  %v5204_v42 = vpop.f32.mrb[17].mxu1 }
 0x373   : > { %2762 = vrot.lane.b32.xlu0 %v5204_v42, %s3644_s16 }
 0x376   : > { %2890 = vrot.lane.b32.xlu1 %v5200_v48, %s3645_s17 }
 0x377   : > { %2888 = vrot.lane.b32.xlu0 %v5204_v42, %s3645_s17 }
 0x379   : > { %v5212_v19 = vpop.f32.mrb[18].mxu1 }
 0x37a   : > { %2768 = vrot.lane.b32.xlu1 %v5212_v19, %s3644_s16  ;;  %v5216_v47 = vpop.f32.mrb[19].mxu1 }
 0x37b   : > { %2766 = vrot.lane.b32.xlu0 %v5216_v47, %s3644_s16 }
 0x37e   : > { %2894 = vrot.lane.b32.xlu1 %v5212_v19, %s3645_s17 }
 0x37f   : > { %2892 = vrot.lane.b32.xlu0 %v5216_v47, %s3645_s17 }
 0x381   : > { %v5224_v11 = vpop.f32.mrb[20].mxu1 }
 0x382   : > { %2772 = vrot.lane.b32.xlu1 %v5224_v11, %s3644_s16  ;;  %v5228_v3 = vpop.f32.mrb[21].mxu1 }
 0x383   : > { %2770 = vrot.lane.b32.xlu0 %v5228_v3, %s3644_s16 }
 0x386   : > { %2898 = vrot.lane.b32.xlu1 %v5224_v11, %s3645_s17 }
 0x387   : > { %2896 = vrot.lane.b32.xlu0 %v5228_v3, %s3645_s17 }
 0x389   : > { %v5236_v43 = vpop.f32.mrb[22].mxu1 }
 0x38a   : > { %2776 = vrot.lane.b32.xlu1 %v5236_v43, %s3644_s16  ;;  %v5240_v9 = vpop.f32.mrb[23].mxu1 }
 0x38b   : > { %2774 = vrot.lane.b32.xlu0 %v5240_v9, %s3644_s16 }
 0x38e   : > { %2902 = vrot.lane.b32.xlu1 %v5236_v43, %s3645_s17 }
 0x38f   : > { %2900 = vrot.lane.b32.xlu0 %v5240_v9, %s3645_s17 }
 0x391   : > { %v5248_v14 = vpop.f32.mrb[24].mxu1 }
 0x392   : > { %2780 = vrot.lane.b32.xlu1 %v5248_v14, %s3644_s16  ;;  %v5252_v30 = vpop.f32.mrb[25].mxu1 }
 0x393   : > { %2778 = vrot.lane.b32.xlu0 %v5252_v30, %s3644_s16 }
 0x396   : > { %2906 = vrot.lane.b32.xlu1 %v5248_v14, %s3645_s17 }
 0x397   : > { %2904 = vrot.lane.b32.xlu0 %v5252_v30, %s3645_s17 }
 0x399   : > { %v5260_v44 = vpop.f32.mrb[26].mxu1 }
 0x39a   : > { %2784 = vrot.lane.b32.xlu1 %v5260_v44, %s3644_s16  ;;  %v5264_v33 = vpop.f32.mrb[27].mxu1 }
 0x39b   : > { %2782 = vrot.lane.b32.xlu0 %v5264_v33, %s3644_s16 }
 0x39e   : > { %2910 = vrot.lane.b32.xlu1 %v5260_v44, %s3645_s17 }
 0x39f   : > { %2908 = vrot.lane.b32.xlu0 %v5264_v33, %s3645_s17 }
 0x3a1   : > { %v5272_v40 = vpop.f32.mrb[28].mxu1 }
 0x3a2   : > { %2788 = vrot.lane.b32.xlu1 %v5272_v40, %s3644_s16  ;;  %v5276_v39 = vpop.f32.mrb[29].mxu1 }
 0x3a3   : > { %2786 = vrot.lane.b32.xlu0 %v5276_v39, %s3644_s16 }
 0x3a6   : > { %2914 = vrot.lane.b32.xlu1 %v5272_v40, %s3645_s17 }
 0x3a7   : > { %2912 = vrot.lane.b32.xlu0 %v5276_v39, %s3645_s17 }
 0x3a9   : > { %v5284_v31 = vpop.f32.mrb[30].mxu1 }
 0x3aa   : > { %2792 = vrot.lane.b32.xlu1 %v5284_v31, %s3644_s16  ;;  %v5288_v0 = vpop.f32.mrb[31].mxu1 }
 0x3ab   : > { %2790 = vrot.lane.b32.xlu0 %v5288_v0, %s3644_s16 }
 0x3ac   : > { %v2737_v38 = vpop.permute.xlu1 %2736 }
 0x3ad   : > { %v3519_v34 = vpop.f32.mrb[32].mxu1  ;;  %v2735_v16 = vpop.permute.xlu0 %2734  ;;  %v2831_v23 = vadd.f32 %v4760_v29, %v2737_v38 }
 0x3ae   : > { %2918 = vrot.lane.b32.xlu1 %v5284_v31, %s3645_s17  ;;  %v2683_v49 = vpop.f32.mrb[33].mxu1  ;;  %v2830_v20 = vadd.f32 %v2735_v16, %v4769_v10  ;;  %v3587_v16 = vld [vmem:[%s3720_s9 + $0x18] sm:$0xff] }
 0x3af   : > { %2916 = vrot.lane.b32.xlu0 %v5288_v0, %s3645_s17 }
 0x3b2   : > { %2796 = vrot.lane.b32.xlu1 %v3519_v34, %s3644_s16 }
 0x3b3   : > { %2794 = vrot.lane.b32.xlu0 %v2683_v49, %s3644_s16 }
 0x3b4   : > { %v2741_v45 = vpop.permute.xlu1 %2740  ;;  %v3522_v46 = vpop.f32.mrb[34].mxu1 }
 0x3b5   : > { %v2739_v1 = vpop.permute.xlu0 %2738  ;;  %v2693_v56 = vpop.f32.mrb[35].mxu1  ;;  %v2833_v63 = vadd.f32 %v5120_v50, %v2741_v45 }
 0x3b6   : > { %2922 = vrot.lane.b32.xlu1 %v3519_v34, %s3645_s17  ;;  %v2832_v25 = vadd.f32 %v2739_v1, %v5124_v57  ;;  %v3588_v1 = vld [vmem:[%s3720_s9 + $0x10] sm:$0xff] }
 0x3b7   : > { %2920 = vrot.lane.b32.xlu0 %v2683_v49, %s3645_s17 }
 0x3b8   : > { %v2867_v4 = vpop.permute.xlu1 %2866 }
 0x3b9   : > { %v2961_v60 = vadd.f32 %v2867_v4, %v2831_v23  ;;  %v2865_v53 = vpop.permute.xlu0 %2864 }
 0x3ba   : > { %v2960_v29 = vadd.f32 %v2865_v53, %v2830_v20  ;;  %2926 = vrot.lane.b32.xlu1 %v3522_v46, %s3645_s17 }
 0x3bb   : > { %v2998_v10 = vmul.f32 %v5305_v5, %v2961_v60  ;;  %2924 = vrot.lane.b32.xlu0 %v2693_v56, %s3645_s17 }
 0x3bc   : > { %v2997_v13 = vmul.f32 %v5305_v5, %v2960_v29  ;;  %v2745_v17 = vpop.permute.xlu1 %2744 }
 0x3bd   : > { %v3035_v51 = vadd.f32 %v5310_v28, %v2998_v10  ;;  %v2743_v22 = vpop.permute.xlu0 %2742  ;;  %v2835_v38 = vadd.f32 %v5128_v15, %v2745_v17 }
 0x3be   : > { %v3034_v61 = vadd.f32 %v5310_v28, %v2997_v13  ;;  %v2834_v46 = vadd.f32 %v2743_v22, %v5132_v41 }
 0x3bf   : > { %v3067_v6 = vadd.f32 %v3585_v54, %v3035_v51  ;;  %v3589_v51 = vld [vmem:[%s3720_s9 + $0x28] sm:$0xff] }
 0x3c0   : > { %v3066_v37 = vadd.f32 %v3586_v26, %v3034_v61  ;;  %v2871_v59 = vpop.permute.xlu1 %2870 }
 0x3c1   : > { %3099 = vst.msk [vmem:[%s5322_s8 + $0x8] sm:$0xff] %vm775_vm2, %v3067_v6  ;;  %v2963_v12 = vadd.f32 %v2871_v59, %v2833_v63  ;;  %v2869_v35 = vpop.permute.xlu0 %2868  ;;  %v3590_v63 = vld [vmem:[%s3720_s9 + $0x20] sm:$0xff] }
 0x3c2   : > { %3098 = vst.msk [vmem:[%s5322_s8] sm:$0xff] %vm775_vm2, %v3066_v37  ;;  %v2962_v52 = vadd.f32 %v2869_v35, %v2832_v25 }
 0x3c3   : > { %v3000_v55 = vmul.f32 %v5305_v5, %v2963_v12 }
 0x3c4   : > { %v2999_v58 = vmul.f32 %v5305_v5, %v2962_v52  ;;  %v2749_v50 = vpop.permute.xlu1 %2748 }
 0x3c5   : > { %v3037_v57 = vadd.f32 %v5310_v28, %v3000_v55  ;;  %v2747_v34 = vpop.permute.xlu0 %2746  ;;  %v2837_v17 = vadd.f32 %v5140_v2, %v2749_v50 }
 0x3c6   : > { %v3036_v49 = vadd.f32 %v5310_v28, %v2999_v58  ;;  %v2836_v61 = vadd.f32 %v2747_v34, %v5144_v8  ;;  %v3591_v58 = vld [vmem:[%s3720_s9 + $0x38] sm:$0xff]  ;;  %v3592_v34 = vld [vmem:[%s3720_s9 + $0x30] sm:$0xff] }
 0x3c7   : > { %v3069_v45 = vadd.f32 %v3587_v16, %v3037_v57 }
 0x3c8   : > { %v3068_v56 = vadd.f32 %v3588_v1, %v3036_v49  ;;  %v2875_v23 = vpop.permute.xlu1 %2874 }
 0x3c9   : > { %3101 = vst.msk [vmem:[%s5322_s8 + $0x18] sm:$0xff] %vm775_vm2, %v3069_v45  ;;  %v2965_v20 = vadd.f32 %v2875_v23, %v2835_v38  ;;  %v2873_v4 = vpop.permute.xlu0 %2872 }
 0x3ca   : > { %3100 = vst.msk [vmem:[%s5322_s8 + $0x10] sm:$0xff] %vm775_vm2, %v3068_v56  ;;  %v2964_v60 = vadd.f32 %v2873_v4, %v2834_v46 }
 0x3cb   : > { %v3002_v53 = vmul.f32 %v5305_v5, %v2965_v20 }
 0x3cc   : > { %v3001_v15 = vmul.f32 %v5305_v5, %v2964_v60  ;;  %v2753_v29 = vpop.permute.xlu1 %2752  ;;  %v3593_v60 = vld [vmem:[%s3720_s9 + $0x48] sm:$0xff] }
 0x3cd   : > { %v3039_v41 = vadd.f32 %v5310_v28, %v3002_v53  ;;  %v2751_v10 = vpop.permute.xlu0 %2750  ;;  %v2839_v55 = vadd.f32 %v5152_v27, %v2753_v29  ;;  %v3594_v29 = vld [vmem:[%s3720_s9 + $0x40] sm:$0xff] }
 0x3ce   : > { %v3038_v13 = vadd.f32 %v5310_v28, %v3001_v15  ;;  %v2838_v57 = vadd.f32 %v2751_v10, %v5156_v24 }
 0x3cf   : > { %v3071_v22 = vadd.f32 %v3589_v51, %v3039_v41 }
 0x3d0   : > { %v3070_v54 = vadd.f32 %v3590_v63, %v3038_v13  ;;  %v2879_v6 = vpop.permute.xlu1 %2878 }
 0x3d1   : > { %3103 = vst.msk [vmem:[%s5322_s8 + $0x28] sm:$0xff] %vm775_vm2, %v3071_v22  ;;  %v2967_v25 = vadd.f32 %v2879_v6, %v2837_v17  ;;  %v2877_v26 = vpop.permute.xlu0 %2876 }
 0x3d2   : > { %3102 = vst.msk [vmem:[%s5322_s8 + $0x20] sm:$0xff] %vm775_vm2, %v3070_v54  ;;  %v2966_v37 = vadd.f32 %v2877_v26, %v2836_v61 }
 0x3d3   : > { %v3004_v59 = vmul.f32 %v5305_v5, %v2967_v25  ;;  %v3595_v25 = vld [vmem:[%s3720_s9 + $0x58] sm:$0xff] }
 0x3d4   : > { %v3003_v2 = vmul.f32 %v5305_v5, %v2966_v37  ;;  %v2757_v12 = vpop.permute.xlu1 %2756 }
 0x3d5   : > { %v3041_v8 = vadd.f32 %v5310_v28, %v3004_v59  ;;  %v2755_v35 = vpop.permute.xlu0 %2754  ;;  %v2841_v4 = vadd.f32 %v5164_v32, %v2757_v12  ;;  %v3596_v59 = vld [vmem:[%s3720_s9 + $0x50] sm:$0xff] }
 0x3d6   : > { %v3040_v52 = vadd.f32 %v5310_v28, %v3003_v2  ;;  %v2840_v15 = vadd.f32 %v2755_v35, %v5168_v18 }
 0x3d7   : > { %v3073_v50 = vadd.f32 %v3591_v58, %v3041_v8 }
 0x3d8   : > { %v3072_v49 = vadd.f32 %v3592_v34, %v3040_v52  ;;  %v2883_v38 = vpop.permute.xlu1 %2882 }
 0x3d9   : > { %3105 = vst.msk [vmem:[%s5322_s8 + $0x38] sm:$0xff] %vm775_vm2, %v3073_v50  ;;  %v2969_v16 = vadd.f32 %v2883_v38, %v2839_v55  ;;  %v2881_v45 = vpop.permute.xlu0 %2880 }
 0x3da   : > { %3104 = vst.msk [vmem:[%s5322_s8 + $0x30] sm:$0xff] %vm775_vm2, %v3072_v49  ;;  %v2968_v46 = vadd.f32 %v2881_v45, %v2838_v57  ;;  %v3597_v49 = vld [vmem:[%s3720_s9 + $0x68] sm:$0xff]  ;;  %v3598_v45 = vld [vmem:[%s3720_s9 + $0x60] sm:$0xff] }
 0x3db   : > { %v3006_v1 = vmul.f32 %v5305_v5, %v2969_v16 }
 0x3dc   : > { %v3005_v27 = vmul.f32 %v5305_v5, %v2968_v46  ;;  %v2761_v56 = vpop.permute.xlu1 %2760 }
 0x3dd   : > { %v3043_v24 = vadd.f32 %v5310_v28, %v3006_v1  ;;  %v2759_v23 = vpop.permute.xlu0 %2758  ;;  %v2843_v6 = vadd.f32 %v5176_v36, %v2761_v56 }
 0x3de   : > { %v3042_v20 = vadd.f32 %v5310_v28, %v3005_v27  ;;  %v2842_v37 = vadd.f32 %v2759_v23, %v5180_v7 }
 0x3df   : > { %v3075_v53 = vadd.f32 %v3593_v60, %v3043_v24 }
 0x3e0   : > { %v3074_v41 = vadd.f32 %v3594_v29, %v3042_v20  ;;  %v2887_v10 = vpop.permute.xlu1 %2886 }
 0x3e1   : > { %3107 = vst.msk [vmem:[%s5322_s8 + $0x48] sm:$0xff] %vm775_vm2, %v3075_v53  ;;  %v2971_v13 = vadd.f32 %v2887_v10, %v2841_v4  ;;  %v2885_v17 = vpop.permute.xlu0 %2884  ;;  %v3600_v10 = vld [vmem:[%s3720_s9 + $0x70] sm:$0xff] }
 0x3e2   : > { %3106 = vst.msk [vmem:[%s5322_s8 + $0x40] sm:$0xff] %vm775_vm2, %v3074_v41  ;;  %v2970_v51 = vadd.f32 %v2885_v17, %v2840_v15  ;;  %v3599_v15 = vld [vmem:[%s3720_s9 + $0x78] sm:$0xff] }
 0x3e3   : > { %v3008_v22 = vmul.f32 %v5305_v5, %v2971_v13 }
 0x3e4   : > { %v3007_v32 = vmul.f32 %v5305_v5, %v2970_v51  ;;  %v2765_v61 = vpop.permute.xlu1 %2764 }
 0x3e5   : > { %v3045_v18 = vadd.f32 %v5310_v28, %v3008_v22  ;;  %v2763_v63 = vpop.permute.xlu0 %2762  ;;  %v2845_v34 = vadd.f32 %v5188_v21, %v2765_v61 }
 0x3e6   : > { %v3044_v54 = vadd.f32 %v5310_v28, %v3007_v32  ;;  %v2844_v16 = vadd.f32 %v2763_v63, %v5192_v62 }
 0x3e7   : > { %v3077_v26 = vadd.f32 %v3595_v25, %v3045_v18  ;;  %v3601_v25 = vld [vmem:[%s3720_s9 + $0x88] sm:$0xff] }
 0x3e8   : > { %v3076_v2 = vadd.f32 %v3596_v59, %v3044_v54  ;;  %v2891_v12 = vpop.permute.xlu1 %2890  ;;  %v3602_v59 = vld [vmem:[%s3720_s9 + $0x80] sm:$0xff] }
 0x3e9   : > { %3109 = vst.msk [vmem:[%s5322_s8 + $0x58] sm:$0xff] %vm775_vm2, %v3077_v26  ;;  %v2973_v8 = vadd.f32 %v2891_v12, %v2843_v6  ;;  %v2889_v35 = vpop.permute.xlu0 %2888 }
 0x3ea   : > { %3108 = vst.msk [vmem:[%s5322_s8 + $0x50] sm:$0xff] %vm775_vm2, %v3076_v2  ;;  %v2972_v52 = vadd.f32 %v2889_v35, %v2842_v37 }
 0x3eb   : > { %v3010_v55 = vmul.f32 %v5305_v5, %v2973_v8 }
 0x3ec   : > { %v3009_v36 = vmul.f32 %v5305_v5, %v2972_v52  ;;  %v2769_v58 = vpop.permute.xlu1 %2768 }
 0x3ed   : > { %v3047_v7 = vadd.f32 %v5310_v28, %v3010_v55  ;;  %v2767_v50 = vpop.permute.xlu0 %2766  ;;  %v2847_v53 = vadd.f32 %v5200_v48, %v2769_v58 }
 0x3ee   : > { %v3046_v57 = vadd.f32 %v5310_v28, %v3009_v36  ;;  %v2846_v41 = vadd.f32 %v2767_v50, %v5204_v42 }
 0x3ef   : > { %v3079_v38 = vadd.f32 %v3597_v49, %v3047_v7 }
 0x3f0   : > { %v3078_v46 = vadd.f32 %v3598_v45, %v3046_v57  ;;  %v2895_v1 = vpop.permute.xlu1 %2894  ;;  %v3603_v57 = vld [vmem:[%s3720_s9 + $0x98] sm:$0xff] }
 0x3f1   : > { %3111 = vst.msk [vmem:[%s5322_s8 + $0x68] sm:$0xff] %vm775_vm2, %v3079_v38  ;;  %v2975_v27 = vadd.f32 %v2895_v1, %v2845_v34  ;;  %v2893_v56 = vpop.permute.xlu0 %2892  ;;  %v3604_v38 = vld [vmem:[%s3720_s9 + $0x90] sm:$0xff] }
 0x3f2   : > { %3110 = vst.msk [vmem:[%s5322_s8 + $0x60] sm:$0xff] %vm775_vm2, %v3078_v46  ;;  %v2974_v24 = vadd.f32 %v2893_v56, %v2844_v16 }
 0x3f3   : > { %v3012_v23 = vmul.f32 %v5305_v5, %v2975_v27 }
 0x3f4   : > { %v3011_v21 = vmul.f32 %v5305_v5, %v2974_v24  ;;  %v2773_v20 = vpop.permute.xlu1 %2772 }
 0x3f5   : > { %v3049_v62 = vadd.f32 %v5310_v28, %v3012_v23  ;;  %v2771_v4 = vpop.permute.xlu0 %2770  ;;  %v2849_v6 = vadd.f32 %v5212_v19, %v2773_v20 }
 0x3f6   : > { %v3048_v60 = vadd.f32 %v5310_v28, %v3011_v21  ;;  %v2848_v37 = vadd.f32 %v2771_v4, %v5216_v47 }
 0x3f7   : > { %v3081_v29 = vadd.f32 %v3599_v15, %v3049_v62  ;;  %v3605_v62 = vld [vmem:[%s3720_s9 + $0xa8] sm:$0xff] }
 0x3f8   : > { %v3080_v13 = vadd.f32 %v3600_v10, %v3048_v60  ;;  %v2899_v17 = vpop.permute.xlu1 %2898 }
 0x3f9   : > { %3113 = vst.msk [vmem:[%s5322_s8 + $0x78] sm:$0xff] %vm775_vm2, %v3081_v29  ;;  %v2977_v51 = vadd.f32 %v2899_v17, %v2847_v53  ;;  %v2897_v22 = vpop.permute.xlu0 %2896  ;;  %v3606_v53 = vld [vmem:[%s3720_s9 + $0xa0] sm:$0xff] }
 0x3fa   : > { %3112 = vst.msk [vmem:[%s5322_s8 + $0x70] sm:$0xff] %vm775_vm2, %v3080_v13  ;;  %v2976_v32 = vadd.f32 %v2897_v22, %v2846_v41 }
 0x3fb   : > { %v3014_v61 = vmul.f32 %v5305_v5, %v2977_v51 }
 0x3fc   : > { %v3013_v48 = vmul.f32 %v5305_v5, %v2976_v32  ;;  %v2777_v18 = vpop.permute.xlu1 %2776 }
 0x3fd   : > { %v3051_v42 = vadd.f32 %v5310_v28, %v3014_v61  ;;  %v2775_v63 = vpop.permute.xlu0 %2774  ;;  %v2851_v50 = vadd.f32 %v5224_v11, %v2777_v18 }
 0x3fe   : > { %v3050_v54 = vadd.f32 %v5310_v28, %v3013_v48  ;;  %v2850_v49 = vadd.f32 %v2775_v63, %v5228_v3  ;;  %v3607_v48 = vld [vmem:[%s3720_s9 + $0xb8] sm:$0xff]  ;;  %v3608_v63 = vld [vmem:[%s3720_s9 + $0xb0] sm:$0xff] }
 0x3ff   : > { %v3083_v26 = vadd.f32 %v3601_v25, %v3051_v42 }
 0x400   : > { %v3082_v2 = vadd.f32 %v3602_v59, %v3050_v54  ;;  %v2903_v12 = vpop.permute.xlu1 %2902 }
 0x401   : > { %3115 = vst.msk [vmem:[%s5322_s8 + $0x88] sm:$0xff] %vm775_vm2, %v3083_v26  ;;  %v2979_v8 = vadd.f32 %v2903_v12, %v2849_v6  ;;  %v2901_v35 = vpop.permute.xlu0 %2900 }
 0x402   : > { %3114 = vst.msk [vmem:[%s5322_s8 + $0x80] sm:$0xff] %vm775_vm2, %v3082_v2  ;;  %v2978_v52 = vadd.f32 %v2901_v35, %v2848_v37 }
 0x403   : > { %v3016_v55 = vmul.f32 %v5305_v5, %v2979_v8 }
 0x404   : > { %v3015_v19 = vmul.f32 %v5305_v5, %v2978_v52  ;;  %v2781_v36 = vpop.permute.xlu1 %2780  ;;  %v3609_v52 = vld [vmem:[%s3720_s9 + $0xc8] sm:$0xff] }
 0x405   : > { %v3053_v47 = vadd.f32 %v5310_v28, %v3016_v55  ;;  %v2779_v58 = vpop.permute.xlu0 %2778  ;;  %v2853_v20 = vadd.f32 %v5236_v43, %v2781_v36  ;;  %v3610_v36 = vld [vmem:[%s3720_s9 + $0xc0] sm:$0xff] }
 0x406   : > { %v3052_v7 = vadd.f32 %v5310_v28, %v3015_v19  ;;  %v2852_v60 = vadd.f32 %v2779_v58, %v5240_v9 }
 0x407   : > { %v3085_v34 = vadd.f32 %v3603_v57, %v3053_v47 }
 0x408   : > { %v3084_v16 = vadd.f32 %v3604_v38, %v3052_v7  ;;  %v2907_v45 = vpop.permute.xlu1 %2906 }
 0x409   : > { %3117 = vst.msk [vmem:[%s5322_s8 + $0x98] sm:$0xff] %vm775_vm2, %v3085_v34  ;;  %v2981_v46 = vadd.f32 %v2907_v45, %v2851_v50  ;;  %v2905_v1 = vpop.permute.xlu0 %2904 }
 0x40a   : > { %3116 = vst.msk [vmem:[%s5322_s8 + $0x90] sm:$0xff] %vm775_vm2, %v3084_v16  ;;  %v2980_v27 = vadd.f32 %v2905_v1, %v2850_v49 }
 0x40b   : > { %v3018_v56 = vmul.f32 %v5305_v5, %v2981_v46  ;;  %v3611_v46 = vld [vmem:[%s3720_s9 + $0xd8] sm:$0xff] }
 0x40c   : > { %v3017_v11 = vmul.f32 %v5305_v5, %v2980_v27  ;;  %v2785_v24 = vpop.permute.xlu1 %2784 }
 0x40d   : > { %v3055_v3 = vadd.f32 %v5310_v28, %v3018_v56  ;;  %v2783_v23 = vpop.permute.xlu0 %2782  ;;  %v2855_v61 = vadd.f32 %v5248_v14, %v2785_v24  ;;  %v3612_v56 = vld [vmem:[%s3720_s9 + $0xd0] sm:$0xff] }
 0x40e   : > { %v3054_v21 = vadd.f32 %v5310_v28, %v3017_v11  ;;  %v2854_v42 = vadd.f32 %v2783_v23, %v5252_v30 }
 0x40f   : > { %v3087_v4 = vadd.f32 %v3605_v62, %v3055_v3 }
 0x410   : > { %v3086_v15 = vadd.f32 %v3606_v53, %v3054_v21  ;;  %v2911_v29 = vpop.permute.xlu1 %2910 }
 0x411   : > { %3119 = vst.msk [vmem:[%s5322_s8 + $0xa8] sm:$0xff] %vm775_vm2, %v3087_v4  ;;  %v2983_v41 = vadd.f32 %v2911_v29, %v2853_v20  ;;  %v2909_v10 = vpop.permute.xlu0 %2908 }
 0x412   : > { %3118 = vst.msk [vmem:[%s5322_s8 + $0xa0] sm:$0xff] %vm775_vm2, %v3086_v15  ;;  %v2982_v13 = vadd.f32 %v2909_v10, %v2852_v60 }
 0x413   : > { %v3020_v17 = vmul.f32 %v5305_v5, %v2983_v41 }
 0x414   : > { %v3019_v43 = vmul.f32 %v5305_v5, %v2982_v13  ;;  %v2789_v51 = vpop.permute.xlu1 %2788 }
 0x415   : > { %v3057_v9 = vadd.f32 %v5310_v28, %v3020_v17  ;;  %v2787_v22 = vpop.permute.xlu0 %2786  ;;  %v2857_v35 = vadd.f32 %v5260_v44, %v2789_v51 }
 0x416   : > { %v3056_v32 = vadd.f32 %v5310_v28, %v3019_v43  ;;  %v2856_v19 = vadd.f32 %v2787_v22, %v5264_v33  ;;  %v3615_v22 = vld [vmem:[%s3720_s9 + $0xf8] sm:$0xff] }
 0x417   : > { %v3089_v18 = vadd.f32 %v3607_v48, %v3057_v9 }
 0x418   : > { %v3088_v54 = vadd.f32 %v3608_v63, %v3056_v32  ;;  %v2915_v6 = vpop.permute.xlu1 %2914 }
 0x419   : > { %3121 = vst.msk [vmem:[%s5322_s8 + $0xb8] sm:$0xff] %vm775_vm2, %v3089_v18  ;;  %v2985_v25 = vadd.f32 %v2915_v6, %v2855_v61  ;;  %v2913_v26 = vpop.permute.xlu0 %2912  ;;  %v3616_v61 = vld [vmem:[%s3720_s9 + $0xf0] sm:$0xff] }
 0x41a   : > { %3120 = vst.msk [vmem:[%s5322_s8 + $0xb0] sm:$0xff] %vm775_vm2, %v3088_v54  ;;  %v2984_v37 = vadd.f32 %v2913_v26, %v2854_v42 }
 0x41b   : > { %v3022_v59 = vmul.f32 %v5305_v5, %v2985_v25 }
 0x41c   : > { %v3021_v14 = vmul.f32 %v5305_v5, %v2984_v37  ;;  %v2793_v2 = vpop.permute.xlu1 %2792 }
 0x41d   : > { %v3059_v30 = vadd.f32 %v5310_v28, %v3022_v59  ;;  %v2791_v12 = vpop.permute.xlu0 %2790  ;;  %v2859_v45 = vadd.f32 %v5272_v40, %v2793_v2 }
 0x41e   : > { %v3058_v8 = vadd.f32 %v5310_v28, %v3021_v14  ;;  %v2858_v27 = vadd.f32 %v2791_v12, %v5276_v39 }
 0x41f   : > { %v3091_v55 = vadd.f32 %v3609_v52, %v3059_v30 }
 0x420   : > { %v3090_v47 = vadd.f32 %v3610_v36, %v3058_v8  ;;  %v2919_v58 = vpop.permute.xlu1 %2918 }
 0x421   : > { %3123 = vst.msk [vmem:[%s5322_s8 + $0xc8] sm:$0xff] %vm775_vm2, %v3091_v55  ;;  %v2987_v7 = vadd.f32 %v2919_v58, %v2857_v35  ;;  %v2917_v50 = vpop.permute.xlu0 %2916 }
 0x422   : > { %3122 = vst.msk [vmem:[%s5322_s8 + $0xc0] sm:$0xff] %vm775_vm2, %v3090_v47  ;;  %v2986_v57 = vadd.f32 %v2917_v50, %v2856_v19 }
 0x423   : > { %v3024_v34 = vmul.f32 %v5305_v5, %v2987_v7 }
 0x424   : > { %v3023_v44 = vmul.f32 %v5305_v5, %v2986_v57  ;;  %v2797_v49 = vpop.permute.xlu1 %2796 }
 0x425   : > { %v3061_v33 = vadd.f32 %v5310_v28, %v3024_v34  ;;  %v2795_v38 = vpop.permute.xlu0 %2794  ;;  %v2861_v20 = vadd.f32 %v5284_v31, %v2797_v49  ;;  %v3613_v31 = vld [vmem:[%s3720_s9 + $0xe8] sm:$0xff] }
 0x426   : > { %v3060_v16 = vadd.f32 %v5310_v28, %v3023_v44  ;;  %v2860_v62 = vadd.f32 %v2795_v38, %v5288_v0  ;;  %v3614_v0 = vld [vmem:[%s3720_s9 + $0xe0] sm:$0xff] }
 0x427   : > { %v3093_v1 = vadd.f32 %v3611_v46, %v3061_v33 }
 0x428   : > { %v3092_v11 = vadd.f32 %v3612_v56, %v3060_v16  ;;  %v2923_v24 = vpop.permute.xlu1 %2922 }
 0x429   : > { %3125 = vst.msk [vmem:[%s5322_s8 + $0xd8] sm:$0xff] %vm775_vm2, %v3093_v1  ;;  %v2989_v3 = vadd.f32 %v2923_v24, %v2859_v45  ;;  %v2921_v23 = vpop.permute.xlu0 %2920 }
 0x42a   : > { %3124 = vst.msk [vmem:[%s5322_s8 + $0xd0] sm:$0xff] %vm775_vm2, %v3092_v11  ;;  %v2988_v21 = vadd.f32 %v2921_v23, %v2858_v27 }
 0x42b   : > { %v3026_v40 = vmul.f32 %v5305_v5, %v2989_v3 }
 0x42c   : > { %v3025_v39 = vmul.f32 %v5305_v5, %v2988_v21  ;;  %v2927_v4 = vpop.permute.xlu1 %2926 }
 0x42d   : > { %v3063_v60 = vadd.f32 %v5310_v28, %v3026_v40  ;;  %v2991_v53 = vadd.f32 %v2927_v4, %v2861_v20  ;;  %v2925_v15 = vpop.permute.xlu0 %2924 }
 0x42e   : > { %v3062_v29 = vadd.f32 %v5310_v28, %v3025_v39  ;;  %v2990_v41 = vadd.f32 %v2925_v15, %v2860_v62 }
 0x42f   : > { %v3095_v10 = vadd.f32 %v3613_v31, %v3063_v60  ;;  %v3028_v13 = vmul.f32 %v5305_v5, %v2991_v53 }
 0x430   : > { %v3094_v17 = vadd.f32 %v3614_v0, %v3062_v29  ;;  %v3027_v43 = vmul.f32 %v5305_v5, %v2990_v41 }
 0x431   : > { %3127 = vst.msk [vmem:[%s5322_s8 + $0xe8] sm:$0xff] %vm775_vm2, %v3095_v10  ;;  %v3065_v51 = vadd.f32 %v5310_v28, %v3028_v13 }
 0x432   : > { %3126 = vst.msk [vmem:[%s5322_s8 + $0xe0] sm:$0xff] %vm775_vm2, %v3094_v17  ;;  %v3064_v9 = vadd.f32 %v5310_v28, %v3027_v43 }
 0x433   : > { %v3097_v32 = vadd.f32 %v3615_v22, %v3065_v51 }
 0x434   : > { %v3096_v48 = vadd.f32 %v3616_v61, %v3064_v9 }
 0x435   : > { %3129 = vst.msk [vmem:[%s5322_s8 + $0xf8] sm:$0xff] %vm775_vm2, %v3097_v32 }
 0x436   : > { %3128 = vst.msk [vmem:[%s5322_s8 + $0xf0] sm:$0xff] %vm775_vm2, %v3096_v48 }
 0x437 PF: > { %s16_s22 = sadd.s32 1, %s3639_s22   ;;  %s5526_s20 = smov %s3635_s21 }
 0x438   : > { %p13_p5 = scmp.ge.s32.totalorder %s16_s22, 4   ;;  %s5527_s21 = smov %s5529_s4 }
 0x43a   :  { %15 = sbr.rel (!%p13_p5) target bundleno = 2 (0x2), region = 70 }

</bundles_post_ra>
